<compile_context>
chip_gen: v7x
topology: tpu7x:2x2x1
jax: 0.10.0
libtpu: 0.0.40
codegen_flags: <defaults>
</compile_context>

<pallas_src>
import jax
import jax.numpy as jnp
from jax import lax
from jax.experimental import pallas as pl
from jax.experimental.pallas import tpu as pltpu


# ----------------------------------------------------------------------------
# VMEM budget: ~75% of the physical per-core VMEM (96 MiB on v5e/v6e, 48 MiB
# on v7x), with a conservative fallback if the query is unavailable.
# ----------------------------------------------------------------------------
def _vmem_budget():
    cap = 64 * 1024 * 1024
    try:
        info = pltpu.get_tpu_info()
        cap = int(getattr(info, "vmem_capacity_bytes", cap))
    except Exception:
        pass
    return int(cap * 0.75)


# ----------------------------------------------------------------------------
# Tile picker: PT = pairs per tile (TB = 2*PT rows in the LSTM batch tile).
#   - PT multiple of 8 (sublane alignment for the c/r split).
#   - gate tile (TB, 4H) f32 capped at ~32 vregs (vreg pressure / no spills).
#   - when the batch allows it, keep >= 2 grid tiles (v7x megacore sharding).
#   - full VMEM accounting incl. double-buffered resident weights + headroom.
# ----------------------------------------------------------------------------
def _pick_pair_tile(b8, s, e, h, budget):
    best = 8
    for pt in (8, 16, 32):
        tb = 2 * pt
        if pt > b8 or b8 % pt != 0:
            continue
        if b8 >= 16 and b8 // pt < 2:
            continue                              # keep >=2 tiles for v7x
        if tb * 4 * h * 4 > 128 * 1024:           # per-step gates <= ~32 vregs
            continue
        need = (2 * s * tb * e * 2                # double-buffered bf16 input block
                + 2 * pt * 4                      # double-buffered f32 score block
                + s * tb * 4 * h * 2              # bf16 hoisted input projection
                + tb * h * (2 + 4)                # bf16 h state + f32 c state
                + 2 * ((e + h) * 4 * h * 2        # double-buffered bf16 W_ih/W_hh
                       + 4 * h * 4                # f32 LSTM bias
                       + h * h * 2 + 4))          # bf16 M + scalar b
        if int(need * 1.15) <= budget:            # ~15% headroom (Mosaic scratch)
            best = pt
    return best


# ----------------------------------------------------------------------------
# Fused kernel: dual-encoder LSTM recurrence + bilinear score.
#   x_ref    : (S*TB, E) bf16, time-major within the tile (row = t*TB + j);
#              rows j in [0, PT) are encoder 1, rows [PT, TB) are encoder 2.
#   wih_ref  : (E, 4H) bf16    whh_ref : (H, 4H) bf16    blstm_ref : (1, 4H) f32
#   m_ref    : (H, H)  bf16    bsc_ref : (1, 1) f32
#   out_ref  : (PT, 1) f32  -> score per pair in this tile
#   xp_sc    : (S*TB, 4H) bf16 scratch (hoisted input projection)
#   hb_sc    : (TB, H) bf16 scratch (hidden state, matmul-ready)
#   c_sc     : (TB, H) f32 scratch (cell state)
# ----------------------------------------------------------------------------
def lstm_dual_score_kernel(x_ref, wih_ref, whh_ref, blstm_ref, m_ref, bsc_ref,
                           out_ref, xp_sc, hb_sc, c_sc):
    TB, H = c_sc.shape
    PT = TB // 2
    S = x_ref.shape[0] // TB

    # (1) Hoisted input projection: ONE (S*TB, E) @ (E, 4H) MXU matmul, stored
    #     bf16 to halve the dominant VMEM term.
    xp_sc[...] = jnp.dot(
        x_ref[...], wih_ref[...],
        preferred_element_type=jnp.float32).astype(jnp.bfloat16)

    # (2) Sequential recurrence: only h_prev @ W_hh (+ f32 bias add) per step.
    hb_sc[...] = jnp.zeros_like(hb_sc)
    c_sc[...] = jnp.zeros_like(c_sc)
    bias = blstm_ref[...]                              # (1, 4H) f32, loop-invariant

    def step(t, carry):
        row = pl.multiple_of(t * TB, TB)               # TB is a multiple of 16
        gates = (xp_sc[pl.ds(row, TB), :].astype(jnp.float32)
                 + bias
                 + jnp.dot(hb_sc[...], whh_ref[...],
                           preferred_element_type=jnp.float32))   # (TB, 4H)
        i = jax.nn.sigmoid(gates[:, 0 * H:1 * H])      # PyTorch gate order i,f,g,o
        f = jax.nn.sigmoid(gates[:, 1 * H:2 * H])
        g = jnp.tanh(gates[:, 2 * H:3 * H])
        o = jax.nn.sigmoid(gates[:, 3 * H:4 * H])
        c_new = f * c_sc[...] + i * g
        c_sc[...] = c_new
        hb_sc[...] = (o * jnp.tanh(c_new)).astype(jnp.bfloat16)   # single cast/step
        return carry

    lax.fori_loop(0, S, step, 0, unroll=min(S, 8))

    # (3) Fused bilinear score: out[j] = c[j] @ M @ r[j]^T + b
    hb = hb_sc[...]
    c = hb[:PT, :]                                     # (PT, H) bf16, encoder 1
    r = hb[PT:, :].astype(jnp.float32)                 # (PT, H) f32, encoder 2
    cm = jnp.dot(c, m_ref[...], preferred_element_type=jnp.float32)
    out_ref[...] = jnp.sum(cm * r, axis=1, keepdims=True) + bsc_ref[...]


# ----------------------------------------------------------------------------
# Parameters (deterministic, mirrors module __init__ / init_params_)
# ----------------------------------------------------------------------------
def init_params(key, n_vocab, emb_dim, h_dim):
    ks = jax.random.split(key, 6)
    emb = jax.random.normal(ks[0], (n_vocab, emb_dim), jnp.float32)
    emb = emb.at[1].set(0.0)                               # padding_idx = 1

    bound = 1.0 / (h_dim ** 0.5)
    w_ih = jax.random.uniform(ks[1], (4 * h_dim, emb_dim), jnp.float32, -bound, bound)
    w_hh = jax.random.uniform(ks[2], (4 * h_dim, h_dim), jnp.float32, -bound, bound)
    b_ih = jax.random.uniform(ks[3], (4 * h_dim,), jnp.float32, -bound, bound)
    b_hh = jax.random.uniform(ks[4], (4 * h_dim,), jnp.float32, -bound, bound)
    # forget-gate bias segment [size//4 : size//2] set to 2 in BOTH biases
    b_ih = b_ih.at[h_dim:2 * h_dim].set(2.0)
    b_hh = b_hh.at[h_dim:2 * h_dim].set(2.0)

    std = (2.0 / (h_dim + h_dim)) ** 0.5                   # xavier_normal(M)
    M = std * jax.random.normal(ks[5], (h_dim, h_dim), jnp.float32)
    b = jnp.zeros((1, 1), jnp.float32)                     # torch.FloatTensor([0])
    return dict(emb=emb, w_ih=w_ih, w_hh=w_hh, b_ih=b_ih, b_hh=b_hh, M=M, b=b)


# ----------------------------------------------------------------------------
# Forward
# ----------------------------------------------------------------------------
def lstm_dual_encoder_forward(params, x1, x2):
    B, S = x1.shape
    E = params['emb'].shape[1]
    H = params['M'].shape[0]

    # Pad the pair batch to a multiple of 8 with the padding token (id 1,
    # zero embedding row); padded rows are dropped after scoring.
    B8 = ((B + 7) // 8) * 8
    pad = jnp.full((B8 - B, S), 1, dtype=x1.dtype)
    x1p = jnp.concatenate([x1, pad], axis=0)               # (B8, S)
    x2p = jnp.concatenate([x2, pad], axis=0)               # (B8, S)

    budget = _vmem_budget()
    PT = _pick_pair_tile(B8, S, E, H, budget)              # pairs per tile
    TB = 2 * PT                                            # LSTM rows per tile
    num_tiles = B8 // PT

    # Gather embeddings directly into per-tile, time-major layout
    # (num_tiles, S*TB, E): row t*TB + j of tile i is token
    #   x1p[i*PT + j, t]        for j <  PT   (encoder 1)
    #   x2p[i*PT + j - PT, t]   for j >= PT   (encoder 2)
    # The permutation is done on the tiny int32 index array only.
    x1t = x1p.reshape(num_tiles, PT, S)
    x2t = x2p.reshape(num_tiles, PT, S)
    idx = (jnp.concatenate([x1t, x2t], axis=1)             # (num_tiles, TB, S)
           .transpose(0, 2, 1)                             # (num_tiles, S, TB)
           .reshape(num_tiles, S * TB))
    x_g = params['emb'][idx].astype(jnp.bfloat16)          # (num_tiles, S*TB, E)

    w_ih_t = params['w_ih'].T.astype(jnp.bfloat16)         # (E, 4H)
    w_hh_t = params['w_hh'].T.astype(jnp.bfloat16)         # (H, 4H)
    bias = (params['b_ih'] + params['b_hh']).reshape(1, -1).astype(jnp.float32)
    m_bf = params['M'].astype(jnp.bfloat16)                # (H, H)
    b_sc = params['b'].reshape(1, 1).astype(jnp.float32)   # (1, 1)

    scores = pl.pallas_call(
        lstm_dual_score_kernel,
        out_shape=jax.ShapeDtypeStruct((B8, 1), jnp.float32),
        grid_spec=pltpu.PrefetchScalarGridSpec(
            num_scalar_prefetch=0,
            grid=(num_tiles,),
            in_specs=[
                pl.BlockSpec((None, S * TB, E), lambda i: (i, 0, 0)),  # activations
                pl.BlockSpec((E, 4 * H), lambda i: (0, 0)),            # W_ih (resident)
                pl.BlockSpec((H, 4 * H), lambda i: (0, 0)),            # W_hh (resident)
                pl.BlockSpec((1, 4 * H), lambda i: (0, 0)),            # LSTM bias
                pl.BlockSpec((H, H), lambda i: (0, 0)),                # M (resident)
                pl.BlockSpec((1, 1), lambda i: (0, 0)),                # score bias
            ],
            out_specs=pl.BlockSpec((PT, 1), lambda i: (i, 0)),
            scratch_shapes=[
                pltpu.VMEM((S * TB, 4 * H), jnp.bfloat16),  # hoisted input projection
                pltpu.VMEM((TB, H), jnp.bfloat16),          # h state (matmul-ready)
                pltpu.VMEM((TB, H), jnp.float32),           # c state
            ],
        ),
        compiler_params=pltpu.CompilerParams(
            dimension_semantics=("parallel",),
            vmem_limit_bytes=budget,
        ),
    )(x_g, w_ih_t, w_hh_t, bias, m_bf, b_sc)

    return scores[:B, 0]                                   # (B,)


if __name__ == "__main__":
    B, S, E, H, V = 2, 8, 64, 128, 50     # small shapes; H lane-aligned (128)
    key = jax.random.PRNGKey(0)
    pkey, k1, k2 = jax.random.split(key, 3)
    params = init_params(pkey, V, E, H)
    x1 = jax.random.randint(k1, (B, S), 0, V, dtype=jnp.int32)
    x2 = jax.random.randint(k2, (B, S), 0, V, dtype=jnp.int32)

    fwd = jax.jit(lstm_dual_encoder_forward)
    out = jax.block_until_ready(fwd(params, x1, x2))
    assert out.shape == (B,) and out.dtype == jnp.float32
    assert bool(jnp.all(jnp.isfinite(out)))
    print("KERNEL_OK")
</pallas_src>

<mosaic_0001>
module attributes {stable_mosaic.version = 11 : i64} {
  func.func @lstm_dual_score_kernel(%arg0: i32, %arg1: memref<1x128x64xbf16, #tpu.memory_space<vmem>>, %arg2: memref<64x512xbf16, #tpu.memory_space<vmem>>, %arg3: memref<128x512xbf16, #tpu.memory_space<vmem>>, %arg4: memref<1x512xf32, #tpu.memory_space<vmem>>, %arg5: memref<128x128xbf16, #tpu.memory_space<vmem>>, %arg6: memref<1x1xf32, #tpu.memory_space<vmem>>, %arg7: memref<8x1xf32, #tpu.memory_space<vmem>>, %arg8: memref<128x512xbf16, #tpu.memory_space<vmem>>, %arg9: memref<16x128xbf16, #tpu.memory_space<vmem>>, %arg10: memref<16x128xf32, #tpu.memory_space<vmem>>) attributes {dimension_semantics = [#tpu.dimension_semantics<parallel>], iteration_bounds = array<i64: 1>, scalar_prefetch = 0 : i64, scratch_operands = 3 : i64, tpu.core_type = #tpu.core_type<tc>, window_params = [{transform_indices = @transform_0, window_bounds = array<i64: 1, 128, 64>}, {pipeline_mode = #tpu.pipeline_mode<synchronous>, transform_indices = @transform_1, window_bounds = array<i64: 64, 512>}, {pipeline_mode = #tpu.pipeline_mode<synchronous>, transform_indices = @transform_2, window_bounds = array<i64: 128, 512>}, {pipeline_mode = #tpu.pipeline_mode<synchronous>, transform_indices = @transform_3, window_bounds = array<i64: 1, 512>}, {pipeline_mode = #tpu.pipeline_mode<synchronous>, transform_indices = @transform_4, window_bounds = array<i64: 128, 128>}, {pipeline_mode = #tpu.pipeline_mode<synchronous>, transform_indices = @transform_5, window_bounds = array<i64: 1, 1>}, {transform_indices = @transform_6, window_bounds = array<i64: 8, 1>}]} {
    %c0 = arith.constant 0 : index
    %c0_0 = arith.constant 0 : index
    %c0_1 = arith.constant 0 : index
    %0 = vector.load %arg1[%c0, %c0_0, %c0_1] : memref<1x128x64xbf16, #tpu.memory_space<vmem>>, vector<1x128x64xbf16>
    %1 = vector.shape_cast %0 : vector<1x128x64xbf16> to vector<128x64xbf16>
    %c0_2 = arith.constant 0 : index
    %c0_3 = arith.constant 0 : index
    %2 = vector.load %arg2[%c0_2, %c0_3] : memref<64x512xbf16, #tpu.memory_space<vmem>>, vector<64x512xbf16>
    %cst = arith.constant dense<0.000000e+00> : vector<128x512xf32>
    %3 = tpu.matmul %1, %2, %cst {dimension_numbers = #tpu.dot_dimension_numbers<[1], [0], [0], [1], [0, 0, 1, 1], [], []>} : vector<128x64xbf16>, vector<64x512xbf16>, vector<128x512xf32> -> vector<128x512xf32>
    %4 = arith.truncf %3 : vector<128x512xf32> to vector<128x512xbf16>
    %c0_4 = arith.constant 0 : index
    %c0_5 = arith.constant 0 : index
    %5 = vector.load %arg8[%c0_4, %c0_5] : memref<128x512xbf16, #tpu.memory_space<vmem>>, vector<128x512xbf16>
    tpu.vector_store %arg8[%c0_4, %c0_5], %4 {strides = array<i32>} : memref<128x512xbf16, #tpu.memory_space<vmem>>, vector<128x512xbf16>,
    %cst_6 = arith.constant 0.000000e+00 : bf16
    %6 = vector.broadcast %cst_6 : bf16 to vector<16x128xbf16>
    %c0_7 = arith.constant 0 : index
    %c0_8 = arith.constant 0 : index
    %7 = vector.load %arg9[%c0_7, %c0_8] : memref<16x128xbf16, #tpu.memory_space<vmem>>, vector<16x128xbf16>
    tpu.vector_store %arg9[%c0_7, %c0_8], %6 {strides = array<i32>} : memref<16x128xbf16, #tpu.memory_space<vmem>>, vector<16x128xbf16>,
    %cst_9 = arith.constant 0.000000e+00 : f32
    %8 = vector.broadcast %cst_9 : f32 to vector<16x128xf32>
    %c0_10 = arith.constant 0 : index
    %c0_11 = arith.constant 0 : index
    %9 = vector.load %arg10[%c0_10, %c0_11] : memref<16x128xf32, #tpu.memory_space<vmem>>, vector<16x128xf32>
    tpu.vector_store %arg10[%c0_10, %c0_11], %8 {strides = array<i32>} : memref<16x128xf32, #tpu.memory_space<vmem>>, vector<16x128xf32>,
    %c0_12 = arith.constant 0 : index
    %c0_13 = arith.constant 0 : index
    %10 = vector.load %arg4[%c0_12, %c0_13] : memref<1x512xf32, #tpu.memory_space<vmem>>, vector<1x512xf32>
    %c0_i32 = arith.constant 0 : i32
    %c16_i32 = arith.constant 16 : i32
    %11 = arith.muli %c0_i32, %c16_i32 : i32
    %12 = tpu.assume_multiple %11, 16 : i32
    %13 = arith.index_cast %12 : i32 to index
    %c0_14 = arith.constant 0 : index
    %14 = vector.load %arg8[%13, %c0_14] : memref<128x512xbf16, #tpu.memory_space<vmem>>, vector<16x512xbf16>
    %15 = arith.extf %14 : vector<16x512xbf16> to vector<16x512xf32>
    %16 = vector.broadcast %10 : vector<1x512xf32> to vector<16x512xf32>
    %17 = arith.addf %15, %16 : vector<16x512xf32>
    %c0_15 = arith.constant 0 : index
    %c0_16 = arith.constant 0 : index
    %18 = vector.load %arg9[%c0_15, %c0_16] : memref<16x128xbf16, #tpu.memory_space<vmem>>, vector<16x128xbf16>
    %c0_17 = arith.constant 0 : index
    %c0_18 = arith.constant 0 : index
    %19 = vector.load %arg3[%c0_17, %c0_18] : memref<128x512xbf16, #tpu.memory_space<vmem>>, vector<128x512xbf16>
    %cst_19 = arith.constant dense<0.000000e+00> : vector<16x512xf32>
    %20 = tpu.matmul %18, %19, %cst_19 {dimension_numbers = #tpu.dot_dimension_numbers<[1], [0], [0], [1], [0, 0, 1, 1], [], []>} : vector<16x128xbf16>, vector<128x512xbf16>, vector<16x512xf32> -> vector<16x512xf32>
    %21 = arith.addf %17, %20 : vector<16x512xf32>
    %22 = vector.extract_strided_slice %21 {offsets = [0, 0], sizes = [16, 128], strides = [1, 1]} : vector<16x512xf32> to vector<16x128xf32>
    %23 = arith.negf %22 : vector<16x128xf32>
    %24 = math.exp %23 : vector<16x128xf32>
    %cst_20 = arith.constant 1.000000e+00 : f32
    %25 = vector.broadcast %cst_20 : f32 to vector<16x128xf32>
    %26 = arith.addf %25, %24 : vector<16x128xf32>
    %27 = arith.divf %25, %26 : vector<16x128xf32>
    %28 = vector.extract_strided_slice %21 {offsets = [0, 128], sizes = [16, 128], strides = [1, 1]} : vector<16x512xf32> to vector<16x128xf32>
    %29 = arith.negf %28 : vector<16x128xf32>
    %30 = math.exp %29 : vector<16x128xf32>
    %cst_21 = arith.constant 1.000000e+00 : f32
    %31 = vector.broadcast %cst_21 : f32 to vector<16x128xf32>
    %32 = arith.addf %31, %30 : vector<16x128xf32>
    %33 = arith.divf %31, %32 : vector<16x128xf32>
    %34 = vector.extract_strided_slice %21 {offsets = [0, 256], sizes = [16, 128], strides = [1, 1]} : vector<16x512xf32> to vector<16x128xf32>
    %35 = math.tanh %34 : vector<16x128xf32>
    %36 = vector.extract_strided_slice %21 {offsets = [0, 384], sizes = [16, 128], strides = [1, 1]} : vector<16x512xf32> to vector<16x128xf32>
    %37 = arith.negf %36 : vector<16x128xf32>
    %38 = math.exp %37 : vector<16x128xf32>
    %cst_22 = arith.constant 1.000000e+00 : f32
    %39 = vector.broadcast %cst_22 : f32 to vector<16x128xf32>
    %40 = arith.addf %39, %38 : vector<16x128xf32>
    %41 = arith.divf %39, %40 : vector<16x128xf32>
    %c0_23 = arith.constant 0 : index
    %c0_24 = arith.constant 0 : index
    %42 = vector.load %arg10[%c0_23, %c0_24] : memref<16x128xf32, #tpu.memory_space<vmem>>, vector<16x128xf32>
    %43 = arith.mulf %33, %42 : vector<16x128xf32>
    %44 = arith.mulf %27, %35 : vector<16x128xf32>
    %45 = arith.addf %43, %44 : vector<16x128xf32>
    %c0_25 = arith.constant 0 : index
    %c0_26 = arith.constant 0 : index
    %46 = vector.load %arg10[%c0_25, %c0_26] : memref<16x128xf32, #tpu.memory_space<vmem>>, vector<16x128xf32>
    tpu.vector_store %arg10[%c0_25, %c0_26], %45 {strides = array<i32>} : memref<16x128xf32, #tpu.memory_space<vmem>>, vector<16x128xf32>,
    %47 = math.tanh %45 : vector<16x128xf32>
    %48 = arith.mulf %41, %47 : vector<16x128xf32>
    %49 = arith.truncf %48 : vector<16x128xf32> to vector<16x128xbf16>
    %c0_27 = arith.constant 0 : index
    %c0_28 = arith.constant 0 : index
    %50 = vector.load %arg9[%c0_27, %c0_28] : memref<16x128xbf16, #tpu.memory_space<vmem>>, vector<16x128xbf16>
    tpu.vector_store %arg9[%c0_27, %c0_28], %49 {strides = array<i32>} : memref<16x128xbf16, #tpu.memory_space<vmem>>, vector<16x128xbf16>,
    %c1_i32 = arith.constant 1 : i32
    %c16_i32_29 = arith.constant 16 : i32
    %51 = arith.muli %c1_i32, %c16_i32_29 : i32
    %52 = tpu.assume_multiple %51, 16 : i32
    %53 = arith.index_cast %52 : i32 to index
    %c0_30 = arith.constant 0 : index
    %54 = vector.load %arg8[%53, %c0_30] : memref<128x512xbf16, #tpu.memory_space<vmem>>, vector<16x512xbf16>
    %55 = arith.extf %54 : vector<16x512xbf16> to vector<16x512xf32>
    %56 = vector.broadcast %10 : vector<1x512xf32> to vector<16x512xf32>
    %57 = arith.addf %55, %56 : vector<16x512xf32>
    %c0_31 = arith.constant 0 : index
    %c0_32 = arith.constant 0 : index
    %58 = vector.load %arg9[%c0_31, %c0_32] : memref<16x128xbf16, #tpu.memory_space<vmem>>, vector<16x128xbf16>
    %c0_33 = arith.constant 0 : index
    %c0_34 = arith.constant 0 : index
    %59 = vector.load %arg3[%c0_33, %c0_34] : memref<128x512xbf16, #tpu.memory_space<vmem>>, vector<128x512xbf16>
    %cst_35 = arith.constant dense<0.000000e+00> : vector<16x512xf32>
    %60 = tpu.matmul %58, %59, %cst_35 {dimension_numbers = #tpu.dot_dimension_numbers<[1], [0], [0], [1], [0, 0, 1, 1], [], []>} : vector<16x128xbf16>, vector<128x512xbf16>, vector<16x512xf32> -> vector<16x512xf32>
    %61 = arith.addf %57, %60 : vector<16x512xf32>
    %62 = vector.extract_strided_slice %61 {offsets = [0, 0], sizes = [16, 128], strides = [1, 1]} : vector<16x512xf32> to vector<16x128xf32>
    %63 = arith.negf %62 : vector<16x128xf32>
    %64 = math.exp %63 : vector<16x128xf32>
    %cst_36 = arith.constant 1.000000e+00 : f32
    %65 = vector.broadcast %cst_36 : f32 to vector<16x128xf32>
    %66 = arith.addf %65, %64 : vector<16x128xf32>
    %67 = arith.divf %65, %66 : vector<16x128xf32>
    %68 = vector.extract_strided_slice %61 {offsets = [0, 128], sizes = [16, 128], strides = [1, 1]} : vector<16x512xf32> to vector<16x128xf32>
    %69 = arith.negf %68 : vector<16x128xf32>
    %70 = math.exp %69 : vector<16x128xf32>
    %cst_37 = arith.constant 1.000000e+00 : f32
    %71 = vector.broadcast %cst_37 : f32 to vector<16x128xf32>
    %72 = arith.addf %71, %70 : vector<16x128xf32>
    %73 = arith.divf %71, %72 : vector<16x128xf32>
    %74 = vector.extract_strided_slice %61 {offsets = [0, 256], sizes = [16, 128], strides = [1, 1]} : vector<16x512xf32> to vector<16x128xf32>
    %75 = math.tanh %74 : vector<16x128xf32>
    %76 = vector.extract_strided_slice %61 {offsets = [0, 384], sizes = [16, 128], strides = [1, 1]} : vector<16x512xf32> to vector<16x128xf32>
    %77 = arith.negf %76 : vector<16x128xf32>
    %78 = math.exp %77 : vector<16x128xf32>
    %cst_38 = arith.constant 1.000000e+00 : f32
    %79 = vector.broadcast %cst_38 : f32 to vector<16x128xf32>
    %80 = arith.addf %79, %78 : vector<16x128xf32>
    %81 = arith.divf %79, %80 : vector<16x128xf32>
    %c0_39 = arith.constant 0 : index
    %c0_40 = arith.constant 0 : index
    %82 = vector.load %arg10[%c0_39, %c0_40] : memref<16x128xf32, #tpu.memory_space<vmem>>, vector<16x128xf32>
    %83 = arith.mulf %73, %82 : vector<16x128xf32>
    %84 = arith.mulf %67, %75 : vector<16x128xf32>
    %85 = arith.addf %83, %84 : vector<16x128xf32>
    %c0_41 = arith.constant 0 : index
    %c0_42 = arith.constant 0 : index
    %86 = vector.load %arg10[%c0_41, %c0_42] : memref<16x128xf32, #tpu.memory_space<vmem>>, vector<16x128xf32>
    tpu.vector_store %arg10[%c0_41, %c0_42], %85 {strides = array<i32>} : memref<16x128xf32, #tpu.memory_space<vmem>>, vector<16x128xf32>,
    %87 = math.tanh %85 : vector<16x128xf32>
    %88 = arith.mulf %81, %87 : vector<16x128xf32>
    %89 = arith.truncf %88 : vector<16x128xf32> to vector<16x128xbf16>
    %c0_43 = arith.constant 0 : index
    %c0_44 = arith.constant 0 : index
    %90 = vector.load %arg9[%c0_43, %c0_44] : memref<16x128xbf16, #tpu.memory_space<vmem>>, vector<16x128xbf16>
    tpu.vector_store %arg9[%c0_43, %c0_44], %89 {strides = array<i32>} : memref<16x128xbf16, #tpu.memory_space<vmem>>, vector<16x128xbf16>,
    %c2_i32 = arith.constant 2 : i32
    %c16_i32_45 = arith.constant 16 : i32
    %91 = arith.muli %c2_i32, %c16_i32_45 : i32
    %92 = tpu.assume_multiple %91, 16 : i32
    %93 = arith.index_cast %92 : i32 to index
    %c0_46 = arith.constant 0 : index
    %94 = vector.load %arg8[%93, %c0_46] : memref<128x512xbf16, #tpu.memory_space<vmem>>, vector<16x512xbf16>
    %95 = arith.extf %94 : vector<16x512xbf16> to vector<16x512xf32>
    %96 = vector.broadcast %10 : vector<1x512xf32> to vector<16x512xf32>
    %97 = arith.addf %95, %96 : vector<16x512xf32>
    %c0_47 = arith.constant 0 : index
    %c0_48 = arith.constant 0 : index
    %98 = vector.load %arg9[%c0_47, %c0_48] : memref<16x128xbf16, #tpu.memory_space<vmem>>, vector<16x128xbf16>
    %c0_49 = arith.constant 0 : index
    %c0_50 = arith.constant 0 : index
    %99 = vector.load %arg3[%c0_49, %c0_50] : memref<128x512xbf16, #tpu.memory_space<vmem>>, vector<128x512xbf16>
    %cst_51 = arith.constant dense<0.000000e+00> : vector<16x512xf32>
    %100 = tpu.matmul %98, %99, %cst_51 {dimension_numbers = #tpu.dot_dimension_numbers<[1], [0], [0], [1], [0, 0, 1, 1], [], []>} : vector<16x128xbf16>, vector<128x512xbf16>, vector<16x512xf32> -> vector<16x512xf32>
    %101 = arith.addf %97, %100 : vector<16x512xf32>
    %102 = vector.extract_strided_slice %101 {offsets = [0, 0], sizes = [16, 128], strides = [1, 1]} : vector<16x512xf32> to vector<16x128xf32>
    %103 = arith.negf %102 : vector<16x128xf32>
    %104 = math.exp %103 : vector<16x128xf32>
    %cst_52 = arith.constant 1.000000e+00 : f32
    %105 = vector.broadcast %cst_52 : f32 to vector<16x128xf32>
    %106 = arith.addf %105, %104 : vector<16x128xf32>
    %107 = arith.divf %105, %106 : vector<16x128xf32>
    %108 = vector.extract_strided_slice %101 {offsets = [0, 128], sizes = [16, 128], strides = [1, 1]} : vector<16x512xf32> to vector<16x128xf32>
    %109 = arith.negf %108 : vector<16x128xf32>
    %110 = math.exp %109 : vector<16x128xf32>
    %cst_53 = arith.constant 1.000000e+00 : f32
    %111 = vector.broadcast %cst_53 : f32 to vector<16x128xf32>
    %112 = arith.addf %111, %110 : vector<16x128xf32>
    %113 = arith.divf %111, %112 : vector<16x128xf32>
    %114 = vector.extract_strided_slice %101 {offsets = [0, 256], sizes = [16, 128], strides = [1, 1]} : vector<16x512xf32> to vector<16x128xf32>
    %115 = math.tanh %114 : vector<16x128xf32>
    %116 = vector.extract_strided_slice %101 {offsets = [0, 384], sizes = [16, 128], strides = [1, 1]} : vector<16x512xf32> to vector<16x128xf32>
    %117 = arith.negf %116 : vector<16x128xf32>
    %118 = math.exp %117 : vector<16x128xf32>
    %cst_54 = arith.constant 1.000000e+00 : f32
    %119 = vector.broadcast %cst_54 : f32 to vector<16x128xf32>
    %120 = arith.addf %119, %118 : vector<16x128xf32>
    %121 = arith.divf %119, %120 : vector<16x128xf32>
    %c0_55 = arith.constant 0 : index
    %c0_56 = arith.constant 0 : index
    %122 = vector.load %arg10[%c0_55, %c0_56] : memref<16x128xf32, #tpu.memory_space<vmem>>, vector<16x128xf32>
    %123 = arith.mulf %113, %122 : vector<16x128xf32>
    %124 = arith.mulf %107, %115 : vector<16x128xf32>
    %125 = arith.addf %123, %124 : vector<16x128xf32>
    %c0_57 = arith.constant 0 : index
    %c0_58 = arith.constant 0 : index
    %126 = vector.load %arg10[%c0_57, %c0_58] : memref<16x128xf32, #tpu.memory_space<vmem>>, vector<16x128xf32>
    tpu.vector_store %arg10[%c0_57, %c0_58], %125 {strides = array<i32>} : memref<16x128xf32, #tpu.memory_space<vmem>>, vector<16x128xf32>,
    %127 = math.tanh %125 : vector<16x128xf32>
    %128 = arith.mulf %121, %127 : vector<16x128xf32>
    %129 = arith.truncf %128 : vector<16x128xf32> to vector<16x128xbf16>
    %c0_59 = arith.constant 0 : index
    %c0_60 = arith.constant 0 : index
    %130 = vector.load %arg9[%c0_59, %c0_60] : memref<16x128xbf16, #tpu.memory_space<vmem>>, vector<16x128xbf16>
    tpu.vector_store %arg9[%c0_59, %c0_60], %129 {strides = array<i32>} : memref<16x128xbf16, #tpu.memory_space<vmem>>, vector<16x128xbf16>,
    %c3_i32 = arith.constant 3 : i32
    %c16_i32_61 = arith.constant 16 : i32
    %131 = arith.muli %c3_i32, %c16_i32_61 : i32
    %132 = tpu.assume_multiple %131, 16 : i32
    %133 = arith.index_cast %132 : i32 to index
    %c0_62 = arith.constant 0 : index
    %134 = vector.load %arg8[%133, %c0_62] : memref<128x512xbf16, #tpu.memory_space<vmem>>, vector<16x512xbf16>
    %135 = arith.extf %134 : vector<16x512xbf16> to vector<16x512xf32>
    %136 = vector.broadcast %10 : vector<1x512xf32> to vector<16x512xf32>
    %137 = arith.addf %135, %136 : vector<16x512xf32>
    %c0_63 = arith.constant 0 : index
    %c0_64 = arith.constant 0 : index
    %138 = vector.load %arg9[%c0_63, %c0_64] : memref<16x128xbf16, #tpu.memory_space<vmem>>, vector<16x128xbf16>
    %c0_65 = arith.constant 0 : index
    %c0_66 = arith.constant 0 : index
    %139 = vector.load %arg3[%c0_65, %c0_66] : memref<128x512xbf16, #tpu.memory_space<vmem>>, vector<128x512xbf16>
    %cst_67 = arith.constant dense<0.000000e+00> : vector<16x512xf32>
    %140 = tpu.matmul %138, %139, %cst_67 {dimension_numbers = #tpu.dot_dimension_numbers<[1], [0], [0], [1], [0, 0, 1, 1], [], []>} : vector<16x128xbf16>, vector<128x512xbf16>, vector<16x512xf32> -> vector<16x512xf32>
    %141 = arith.addf %137, %140 : vector<16x512xf32>
    %142 = vector.extract_strided_slice %141 {offsets = [0, 0], sizes = [16, 128], strides = [1, 1]} : vector<16x512xf32> to vector<16x128xf32>
    %143 = arith.negf %142 : vector<16x128xf32>
    %144 = math.exp %143 : vector<16x128xf32>
    %cst_68 = arith.constant 1.000000e+00 : f32
    %145 = vector.broadcast %cst_68 : f32 to vector<16x128xf32>
    %146 = arith.addf %145, %144 : vector<16x128xf32>
    %147 = arith.divf %145, %146 : vector<16x128xf32>
    %148 = vector.extract_strided_slice %141 {offsets = [0, 128], sizes = [16, 128], strides = [1, 1]} : vector<16x512xf32> to vector<16x128xf32>
    %149 = arith.negf %148 : vector<16x128xf32>
    %150 = math.exp %149 : vector<16x128xf32>
    %cst_69 = arith.constant 1.000000e+00 : f32
    %151 = vector.broadcast %cst_69 : f32 to vector<16x128xf32>
    %152 = arith.addf %151, %150 : vector<16x128xf32>
    %153 = arith.divf %151, %152 : vector<16x128xf32>
    %154 = vector.extract_strided_slice %141 {offsets = [0, 256], sizes = [16, 128], strides = [1, 1]} : vector<16x512xf32> to vector<16x128xf32>
    %155 = math.tanh %154 : vector<16x128xf32>
    %156 = vector.extract_strided_slice %141 {offsets = [0, 384], sizes = [16, 128], strides = [1, 1]} : vector<16x512xf32> to vector<16x128xf32>
    %157 = arith.negf %156 : vector<16x128xf32>
    %158 = math.exp %157 : vector<16x128xf32>
    %cst_70 = arith.constant 1.000000e+00 : f32
    %159 = vector.broadcast %cst_70 : f32 to vector<16x128xf32>
    %160 = arith.addf %159, %158 : vector<16x128xf32>
    %161 = arith.divf %159, %160 : vector<16x128xf32>
    %c0_71 = arith.constant 0 : index
    %c0_72 = arith.constant 0 : index
    %162 = vector.load %arg10[%c0_71, %c0_72] : memref<16x128xf32, #tpu.memory_space<vmem>>, vector<16x128xf32>
    %163 = arith.mulf %153, %162 : vector<16x128xf32>
    %164 = arith.mulf %147, %155 : vector<16x128xf32>
    %165 = arith.addf %163, %164 : vector<16x128xf32>
    %c0_73 = arith.constant 0 : index
    %c0_74 = arith.constant 0 : index
    %166 = vector.load %arg10[%c0_73, %c0_74] : memref<16x128xf32, #tpu.memory_space<vmem>>, vector<16x128xf32>
    tpu.vector_store %arg10[%c0_73, %c0_74], %165 {strides = array<i32>} : memref<16x128xf32, #tpu.memory_space<vmem>>, vector<16x128xf32>,
    %167 = math.tanh %165 : vector<16x128xf32>
    %168 = arith.mulf %161, %167 : vector<16x128xf32>
    %169 = arith.truncf %168 : vector<16x128xf32> to vector<16x128xbf16>
    %c0_75 = arith.constant 0 : index
    %c0_76 = arith.constant 0 : index
    %170 = vector.load %arg9[%c0_75, %c0_76] : memref<16x128xbf16, #tpu.memory_space<vmem>>, vector<16x128xbf16>
    tpu.vector_store %arg9[%c0_75, %c0_76], %169 {strides = array<i32>} : memref<16x128xbf16, #tpu.memory_space<vmem>>, vector<16x128xbf16>,
    %c4_i32 = arith.constant 4 : i32
    %c16_i32_77 = arith.constant 16 : i32
    %171 = arith.muli %c4_i32, %c16_i32_77 : i32
    %172 = tpu.assume_multiple %171, 16 : i32
    %173 = arith.index_cast %172 : i32 to index
    %c0_78 = arith.constant 0 : index
    %174 = vector.load %arg8[%173, %c0_78] : memref<128x512xbf16, #tpu.memory_space<vmem>>, vector<16x512xbf16>
    %175 = arith.extf %174 : vector<16x512xbf16> to vector<16x512xf32>
    %176 = vector.broadcast %10 : vector<1x512xf32> to vector<16x512xf32>
    %177 = arith.addf %175, %176 : vector<16x512xf32>
    %c0_79 = arith.constant 0 : index
    %c0_80 = arith.constant 0 : index
    %178 = vector.load %arg9[%c0_79, %c0_80] : memref<16x128xbf16, #tpu.memory_space<vmem>>, vector<16x128xbf16>
    %c0_81 = arith.constant 0 : index
    %c0_82 = arith.constant 0 : index
    %179 = vector.load %arg3[%c0_81, %c0_82] : memref<128x512xbf16, #tpu.memory_space<vmem>>, vector<128x512xbf16>
    %cst_83 = arith.constant dense<0.000000e+00> : vector<16x512xf32>
    %180 = tpu.matmul %178, %179, %cst_83 {dimension_numbers = #tpu.dot_dimension_numbers<[1], [0], [0], [1], [0, 0, 1, 1], [], []>} : vector<16x128xbf16>, vector<128x512xbf16>, vector<16x512xf32> -> vector<16x512xf32>
    %181 = arith.addf %177, %180 : vector<16x512xf32>
    %182 = vector.extract_strided_slice %181 {offsets = [0, 0], sizes = [16, 128], strides = [1, 1]} : vector<16x512xf32> to vector<16x128xf32>
    %183 = arith.negf %182 : vector<16x128xf32>
    %184 = math.exp %183 : vector<16x128xf32>
    %cst_84 = arith.constant 1.000000e+00 : f32
    %185 = vector.broadcast %cst_84 : f32 to vector<16x128xf32>
    %186 = arith.addf %185, %184 : vector<16x128xf32>
    %187 = arith.divf %185, %186 : vector<16x128xf32>
    %188 = vector.extract_strided_slice %181 {offsets = [0, 128], sizes = [16, 128], strides = [1, 1]} : vector<16x512xf32> to vector<16x128xf32>
    %189 = arith.negf %188 : vector<16x128xf32>
    %190 = math.exp %189 : vector<16x128xf32>
    %cst_85 = arith.constant 1.000000e+00 : f32
    %191 = vector.broadcast %cst_85 : f32 to vector<16x128xf32>
    %192 = arith.addf %191, %190 : vector<16x128xf32>
    %193 = arith.divf %191, %192 : vector<16x128xf32>
    %194 = vector.extract_strided_slice %181 {offsets = [0, 256], sizes = [16, 128], strides = [1, 1]} : vector<16x512xf32> to vector<16x128xf32>
    %195 = math.tanh %194 : vector<16x128xf32>
    %196 = vector.extract_strided_slice %181 {offsets = [0, 384], sizes = [16, 128], strides = [1, 1]} : vector<16x512xf32> to vector<16x128xf32>
    %197 = arith.negf %196 : vector<16x128xf32>
    %198 = math.exp %197 : vector<16x128xf32>
    %cst_86 = arith.constant 1.000000e+00 : f32
    %199 = vector.broadcast %cst_86 : f32 to vector<16x128xf32>
    %200 = arith.addf %199, %198 : vector<16x128xf32>
    %201 = arith.divf %199, %200 : vector<16x128xf32>
    %c0_87 = arith.constant 0 : index
    %c0_88 = arith.constant 0 : index
    %202 = vector.load %arg10[%c0_87, %c0_88] : memref<16x128xf32, #tpu.memory_space<vmem>>, vector<16x128xf32>
    %203 = arith.mulf %193, %202 : vector<16x128xf32>
    %204 = arith.mulf %187, %195 : vector<16x128xf32>
    %205 = arith.addf %203, %204 : vector<16x128xf32>
    %c0_89 = arith.constant 0 : index
    %c0_90 = arith.constant 0 : index
    %206 = vector.load %arg10[%c0_89, %c0_90] : memref<16x128xf32, #tpu.memory_space<vmem>>, vector<16x128xf32>
    tpu.vector_store %arg10[%c0_89, %c0_90], %205 {strides = array<i32>} : memref<16x128xf32, #tpu.memory_space<vmem>>, vector<16x128xf32>,
    %207 = math.tanh %205 : vector<16x128xf32>
    %208 = arith.mulf %201, %207 : vector<16x128xf32>
    %209 = arith.truncf %208 : vector<16x128xf32> to vector<16x128xbf16>
    %c0_91 = arith.constant 0 : index
    %c0_92 = arith.constant 0 : index
    %210 = vector.load %arg9[%c0_91, %c0_92] : memref<16x128xbf16, #tpu.memory_space<vmem>>, vector<16x128xbf16>
    tpu.vector_store %arg9[%c0_91, %c0_92], %209 {strides = array<i32>} : memref<16x128xbf16, #tpu.memory_space<vmem>>, vector<16x128xbf16>,
    %c5_i32 = arith.constant 5 : i32
    %c16_i32_93 = arith.constant 16 : i32
    %211 = arith.muli %c5_i32, %c16_i32_93 : i32
    %212 = tpu.assume_multiple %211, 16 : i32
    %213 = arith.index_cast %212 : i32 to index
    %c0_94 = arith.constant 0 : index
    %214 = vector.load %arg8[%213, %c0_94] : memref<128x512xbf16, #tpu.memory_space<vmem>>, vector<16x512xbf16>
    %215 = arith.extf %214 : vector<16x512xbf16> to vector<16x512xf32>
    %216 = vector.broadcast %10 : vector<1x512xf32> to vector<16x512xf32>
    %217 = arith.addf %215, %216 : vector<16x512xf32>
    %c0_95 = arith.constant 0 : index
    %c0_96 = arith.constant 0 : index
    %218 = vector.load %arg9[%c0_95, %c0_96] : memref<16x128xbf16, #tpu.memory_space<vmem>>, vector<16x128xbf16>
    %c0_97 = arith.constant 0 : index
    %c0_98 = arith.constant 0 : index
    %219 = vector.load %arg3[%c0_97, %c0_98] : memref<128x512xbf16, #tpu.memory_space<vmem>>, vector<128x512xbf16>
    %cst_99 = arith.constant dense<0.000000e+00> : vector<16x512xf32>
    %220 = tpu.matmul %218, %219, %cst_99 {dimension_numbers = #tpu.dot_dimension_numbers<[1], [0], [0], [1], [0, 0, 1, 1], [], []>} : vector<16x128xbf16>, vector<128x512xbf16>, vector<16x512xf32> -> vector<16x512xf32>
    %221 = arith.addf %217, %220 : vector<16x512xf32>
    %222 = vector.extract_strided_slice %221 {offsets = [0, 0], sizes = [16, 128], strides = [1, 1]} : vector<16x512xf32> to vector<16x128xf32>
    %223 = arith.negf %222 : vector<16x128xf32>
    %224 = math.exp %223 : vector<16x128xf32>
    %cst_100 = arith.constant 1.000000e+00 : f32
    %225 = vector.broadcast %cst_100 : f32 to vector<16x128xf32>
    %226 = arith.addf %225, %224 : vector<16x128xf32>
    %227 = arith.divf %225, %226 : vector<16x128xf32>
    %228 = vector.extract_strided_slice %221 {offsets = [0, 128], sizes = [16, 128], strides = [1, 1]} : vector<16x512xf32> to vector<16x128xf32>
    %229 = arith.negf %228 : vector<16x128xf32>
    %230 = math.exp %229 : vector<16x128xf32>
    %cst_101 = arith.constant 1.000000e+00 : f32
    %231 = vector.broadcast %cst_101 : f32 to vector<16x128xf32>
    %232 = arith.addf %231, %230 : vector<16x128xf32>
    %233 = arith.divf %231, %232 : vector<16x128xf32>
    %234 = vector.extract_strided_slice %221 {offsets = [0, 256], sizes = [16, 128], strides = [1, 1]} : vector<16x512xf32> to vector<16x128xf32>
    %235 = math.tanh %234 : vector<16x128xf32>
    %236 = vector.extract_strided_slice %221 {offsets = [0, 384], sizes = [16, 128], strides = [1, 1]} : vector<16x512xf32> to vector<16x128xf32>
    %237 = arith.negf %236 : vector<16x128xf32>
    %238 = math.exp %237 : vector<16x128xf32>
    %cst_102 = arith.constant 1.000000e+00 : f32
    %239 = vector.broadcast %cst_102 : f32 to vector<16x128xf32>
    %240 = arith.addf %239, %238 : vector<16x128xf32>
    %241 = arith.divf %239, %240 : vector<16x128xf32>
    %c0_103 = arith.constant 0 : index
    %c0_104 = arith.constant 0 : index
    %242 = vector.load %arg10[%c0_103, %c0_104] : memref<16x128xf32, #tpu.memory_space<vmem>>, vector<16x128xf32>
    %243 = arith.mulf %233, %242 : vector<16x128xf32>
    %244 = arith.mulf %227, %235 : vector<16x128xf32>
    %245 = arith.addf %243, %244 : vector<16x128xf32>
    %c0_105 = arith.constant 0 : index
    %c0_106 = arith.constant 0 : index
    %246 = vector.load %arg10[%c0_105, %c0_106] : memref<16x128xf32, #tpu.memory_space<vmem>>, vector<16x128xf32>
    tpu.vector_store %arg10[%c0_105, %c0_106], %245 {strides = array<i32>} : memref<16x128xf32, #tpu.memory_space<vmem>>, vector<16x128xf32>,
    %247 = math.tanh %245 : vector<16x128xf32>
    %248 = arith.mulf %241, %247 : vector<16x128xf32>
    %249 = arith.truncf %248 : vector<16x128xf32> to vector<16x128xbf16>
    %c0_107 = arith.constant 0 : index
    %c0_108 = arith.constant 0 : index
    %250 = vector.load %arg9[%c0_107, %c0_108] : memref<16x128xbf16, #tpu.memory_space<vmem>>, vector<16x128xbf16>
    tpu.vector_store %arg9[%c0_107, %c0_108], %249 {strides = array<i32>} : memref<16x128xbf16, #tpu.memory_space<vmem>>, vector<16x128xbf16>,
    %c6_i32 = arith.constant 6 : i32
    %c16_i32_109 = arith.constant 16 : i32
    %251 = arith.muli %c6_i32, %c16_i32_109 : i32
    %252 = tpu.assume_multiple %251, 16 : i32
    %253 = arith.index_cast %252 : i32 to index
    %c0_110 = arith.constant 0 : index
    %254 = vector.load %arg8[%253, %c0_110] : memref<128x512xbf16, #tpu.memory_space<vmem>>, vector<16x512xbf16>
    %255 = arith.extf %254 : vector<16x512xbf16> to vector<16x512xf32>
    %256 = vector.broadcast %10 : vector<1x512xf32> to vector<16x512xf32>
    %257 = arith.addf %255, %256 : vector<16x512xf32>
    %c0_111 = arith.constant 0 : index
    %c0_112 = arith.constant 0 : index
    %258 = vector.load %arg9[%c0_111, %c0_112] : memref<16x128xbf16, #tpu.memory_space<vmem>>, vector<16x128xbf16>
    %c0_113 = arith.constant 0 : index
    %c0_114 = arith.constant 0 : index
    %259 = vector.load %arg3[%c0_113, %c0_114] : memref<128x512xbf16, #tpu.memory_space<vmem>>, vector<128x512xbf16>
    %cst_115 = arith.constant dense<0.000000e+00> : vector<16x512xf32>
    %260 = tpu.matmul %258, %259, %cst_115 {dimension_numbers = #tpu.dot_dimension_numbers<[1], [0], [0], [1], [0, 0, 1, 1], [], []>} : vector<16x128xbf16>, vector<128x512xbf16>, vector<16x512xf32> -> vector<16x512xf32>
    %261 = arith.addf %257, %260 : vector<16x512xf32>
    %262 = vector.extract_strided_slice %261 {offsets = [0, 0], sizes = [16, 128], strides = [1, 1]} : vector<16x512xf32> to vector<16x128xf32>
    %263 = arith.negf %262 : vector<16x128xf32>
    %264 = math.exp %263 : vector<16x128xf32>
    %cst_116 = arith.constant 1.000000e+00 : f32
    %265 = vector.broadcast %cst_116 : f32 to vector<16x128xf32>
    %266 = arith.addf %265, %264 : vector<16x128xf32>
    %267 = arith.divf %265, %266 : vector<16x128xf32>
    %268 = vector.extract_strided_slice %261 {offsets = [0, 128], sizes = [16, 128], strides = [1, 1]} : vector<16x512xf32> to vector<16x128xf32>
    %269 = arith.negf %268 : vector<16x128xf32>
    %270 = math.exp %269 : vector<16x128xf32>
    %cst_117 = arith.constant 1.000000e+00 : f32
    %271 = vector.broadcast %cst_117 : f32 to vector<16x128xf32>
    %272 = arith.addf %271, %270 : vector<16x128xf32>
    %273 = arith.divf %271, %272 : vector<16x128xf32>
    %274 = vector.extract_strided_slice %261 {offsets = [0, 256], sizes = [16, 128], strides = [1, 1]} : vector<16x512xf32> to vector<16x128xf32>
    %275 = math.tanh %274 : vector<16x128xf32>
    %276 = vector.extract_strided_slice %261 {offsets = [0, 384], sizes = [16, 128], strides = [1, 1]} : vector<16x512xf32> to vector<16x128xf32>
    %277 = arith.negf %276 : vector<16x128xf32>
    %278 = math.exp %277 : vector<16x128xf32>
    %cst_118 = arith.constant 1.000000e+00 : f32
    %279 = vector.broadcast %cst_118 : f32 to vector<16x128xf32>
    %280 = arith.addf %279, %278 : vector<16x128xf32>
    %281 = arith.divf %279, %280 : vector<16x128xf32>
    %c0_119 = arith.constant 0 : index
    %c0_120 = arith.constant 0 : index
    %282 = vector.load %arg10[%c0_119, %c0_120] : memref<16x128xf32, #tpu.memory_space<vmem>>, vector<16x128xf32>
    %283 = arith.mulf %273, %282 : vector<16x128xf32>
    %284 = arith.mulf %267, %275 : vector<16x128xf32>
    %285 = arith.addf %283, %284 : vector<16x128xf32>
    %c0_121 = arith.constant 0 : index
    %c0_122 = arith.constant 0 : index
    %286 = vector.load %arg10[%c0_121, %c0_122] : memref<16x128xf32, #tpu.memory_space<vmem>>, vector<16x128xf32>
    tpu.vector_store %arg10[%c0_121, %c0_122], %285 {strides = array<i32>} : memref<16x128xf32, #tpu.memory_space<vmem>>, vector<16x128xf32>,
    %287 = math.tanh %285 : vector<16x128xf32>
    %288 = arith.mulf %281, %287 : vector<16x128xf32>
    %289 = arith.truncf %288 : vector<16x128xf32> to vector<16x128xbf16>
    %c0_123 = arith.constant 0 : index
    %c0_124 = arith.constant 0 : index
    %290 = vector.load %arg9[%c0_123, %c0_124] : memref<16x128xbf16, #tpu.memory_space<vmem>>, vector<16x128xbf16>
    tpu.vector_store %arg9[%c0_123, %c0_124], %289 {strides = array<i32>} : memref<16x128xbf16, #tpu.memory_space<vmem>>, vector<16x128xbf16>,
    %c7_i32 = arith.constant 7 : i32
    %c16_i32_125 = arith.constant 16 : i32
    %291 = arith.muli %c7_i32, %c16_i32_125 : i32
    %292 = tpu.assume_multiple %291, 16 : i32
    %293 = arith.index_cast %292 : i32 to index
    %c0_126 = arith.constant 0 : index
    %294 = vector.load %arg8[%293, %c0_126] : memref<128x512xbf16, #tpu.memory_space<vmem>>, vector<16x512xbf16>
    %295 = arith.extf %294 : vector<16x512xbf16> to vector<16x512xf32>
    %296 = vector.broadcast %10 : vector<1x512xf32> to vector<16x512xf32>
    %297 = arith.addf %295, %296 : vector<16x512xf32>
    %c0_127 = arith.constant 0 : index
    %c0_128 = arith.constant 0 : index
    %298 = vector.load %arg9[%c0_127, %c0_128] : memref<16x128xbf16, #tpu.memory_space<vmem>>, vector<16x128xbf16>
    %c0_129 = arith.constant 0 : index
    %c0_130 = arith.constant 0 : index
    %299 = vector.load %arg3[%c0_129, %c0_130] : memref<128x512xbf16, #tpu.memory_space<vmem>>, vector<128x512xbf16>
    %cst_131 = arith.constant dense<0.000000e+00> : vector<16x512xf32>
    %300 = tpu.matmul %298, %299, %cst_131 {dimension_numbers = #tpu.dot_dimension_numbers<[1], [0], [0], [1], [0, 0, 1, 1], [], []>} : vector<16x128xbf16>, vector<128x512xbf16>, vector<16x512xf32> -> vector<16x512xf32>
    %301 = arith.addf %297, %300 : vector<16x512xf32>
    %302 = vector.extract_strided_slice %301 {offsets = [0, 0], sizes = [16, 128], strides = [1, 1]} : vector<16x512xf32> to vector<16x128xf32>
    %303 = arith.negf %302 : vector<16x128xf32>
    %304 = math.exp %303 : vector<16x128xf32>
    %cst_132 = arith.constant 1.000000e+00 : f32
    %305 = vector.broadcast %cst_132 : f32 to vector<16x128xf32>
    %306 = arith.addf %305, %304 : vector<16x128xf32>
    %307 = arith.divf %305, %306 : vector<16x128xf32>
    %308 = vector.extract_strided_slice %301 {offsets = [0, 128], sizes = [16, 128], strides = [1, 1]} : vector<16x512xf32> to vector<16x128xf32>
    %309 = arith.negf %308 : vector<16x128xf32>
    %310 = math.exp %309 : vector<16x128xf32>
    %cst_133 = arith.constant 1.000000e+00 : f32
    %311 = vector.broadcast %cst_133 : f32 to vector<16x128xf32>
    %312 = arith.addf %311, %310 : vector<16x128xf32>
    %313 = arith.divf %311, %312 : vector<16x128xf32>
    %314 = vector.extract_strided_slice %301 {offsets = [0, 256], sizes = [16, 128], strides = [1, 1]} : vector<16x512xf32> to vector<16x128xf32>
    %315 = math.tanh %314 : vector<16x128xf32>
    %316 = vector.extract_strided_slice %301 {offsets = [0, 384], sizes = [16, 128], strides = [1, 1]} : vector<16x512xf32> to vector<16x128xf32>
    %317 = arith.negf %316 : vector<16x128xf32>
    %318 = math.exp %317 : vector<16x128xf32>
    %cst_134 = arith.constant 1.000000e+00 : f32
    %319 = vector.broadcast %cst_134 : f32 to vector<16x128xf32>
    %320 = arith.addf %319, %318 : vector<16x128xf32>
    %321 = arith.divf %319, %320 : vector<16x128xf32>
    %c0_135 = arith.constant 0 : index
    %c0_136 = arith.constant 0 : index
    %322 = vector.load %arg10[%c0_135, %c0_136] : memref<16x128xf32, #tpu.memory_space<vmem>>, vector<16x128xf32>
    %323 = arith.mulf %313, %322 : vector<16x128xf32>
    %324 = arith.mulf %307, %315 : vector<16x128xf32>
    %325 = arith.addf %323, %324 : vector<16x128xf32>
    %c0_137 = arith.constant 0 : index
    %c0_138 = arith.constant 0 : index
    %326 = vector.load %arg10[%c0_137, %c0_138] : memref<16x128xf32, #tpu.memory_space<vmem>>, vector<16x128xf32>
    tpu.vector_store %arg10[%c0_137, %c0_138], %325 {strides = array<i32>} : memref<16x128xf32, #tpu.memory_space<vmem>>, vector<16x128xf32>,
    %327 = math.tanh %325 : vector<16x128xf32>
    %328 = arith.mulf %321, %327 : vector<16x128xf32>
    %329 = arith.truncf %328 : vector<16x128xf32> to vector<16x128xbf16>
    %c0_139 = arith.constant 0 : index
    %c0_140 = arith.constant 0 : index
    %330 = vector.load %arg9[%c0_139, %c0_140] : memref<16x128xbf16, #tpu.memory_space<vmem>>, vector<16x128xbf16>
    tpu.vector_store %arg9[%c0_139, %c0_140], %329 {strides = array<i32>} : memref<16x128xbf16, #tpu.memory_space<vmem>>, vector<16x128xbf16>,
    %c8_i32 = arith.constant 8 : i32
    %c0_141 = arith.constant 0 : index
    %c0_142 = arith.constant 0 : index
    %331 = vector.load %arg9[%c0_141, %c0_142] : memref<16x128xbf16, #tpu.memory_space<vmem>>, vector<16x128xbf16>
    %332 = vector.extract_strided_slice %331 {offsets = [0, 0], sizes = [8, 128], strides = [1, 1]} : vector<16x128xbf16> to vector<8x128xbf16>
    %333 = vector.extract_strided_slice %331 {offsets = [8, 0], sizes = [8, 128], strides = [1, 1]} : vector<16x128xbf16> to vector<8x128xbf16>
    %334 = arith.extf %333 : vector<8x128xbf16> to vector<8x128xf32>
    %c0_143 = arith.constant 0 : index
    %c0_144 = arith.constant 0 : index
    %335 = vector.load %arg5[%c0_143, %c0_144] : memref<128x128xbf16, #tpu.memory_space<vmem>>, vector<128x128xbf16>
    %cst_145 = arith.constant dense<0.000000e+00> : vector<8x128xf32>
    %336 = tpu.matmul %332, %335, %cst_145 {dimension_numbers = #tpu.dot_dimension_numbers<[1], [0], [0], [1], [0, 0, 1, 1], [], []>} : vector<8x128xbf16>, vector<128x128xbf16>, vector<8x128xf32> -> vector<8x128xf32>
    %337 = arith.mulf %336, %334 : vector<8x128xf32>
    %cst_146 = arith.constant dense<0.000000e+00> : vector<8xf32>
    %338 = vector.multi_reduction <add>, %337, %cst_146 [1] : vector<8x128xf32> to vector<8xf32>
    %339 = vector.shape_cast %338 : vector<8xf32> to vector<8x1xf32>
    %c0_147 = arith.constant 0 : index
    %c0_148 = arith.constant 0 : index
    %340 = vector.load %arg6[%c0_147, %c0_148] : memref<1x1xf32, #tpu.memory_space<vmem>>, vector<1x1xf32>
    %341 = vector.broadcast %340 : vector<1x1xf32> to vector<8x1xf32>
    %342 = arith.addf %339, %341 : vector<8x1xf32>
    %c0_149 = arith.constant 0 : index
    %c0_150 = arith.constant 0 : index
    %343 = vector.load %arg7[%c0_149, %c0_150] : memref<8x1xf32, #tpu.memory_space<vmem>>, vector<8x1xf32>
    tpu.vector_store %arg7[%c0_149, %c0_150], %342 {strides = array<i32>} : memref<8x1xf32, #tpu.memory_space<vmem>>, vector<8x1xf32>,
    return
  }
  func.func @transform_0(%arg0: i32) -> (i32, i32, i32) {
    %c0_i32 = arith.constant 0 : i32
    %c0_i32_0 = arith.constant 0 : i32
    %c0_i32_1 = arith.constant 0 : i32
    return %arg0, %c0_i32, %c0_i32_0 : i32, i32, i32
  }
  func.func @transform_1(%arg0: i32) -> (i32, i32) {
    %c0_i32 = arith.constant 0 : i32
    %c0_i32_0 = arith.constant 0 : i32
    %c0_i32_1 = arith.constant 0 : i32
    return %c0_i32, %c0_i32_0 : i32, i32
  }
  func.func @transform_2(%arg0: i32) -> (i32, i32) {
    %c0_i32 = arith.constant 0 : i32
    %c0_i32_0 = arith.constant 0 : i32
    %c0_i32_1 = arith.constant 0 : i32
    return %c0_i32, %c0_i32_0 : i32, i32
  }
  func.func @transform_3(%arg0: i32) -> (i32, i32) {
    %c0_i32 = arith.constant 0 : i32
    %c0_i32_0 = arith.constant 0 : i32
    %c0_i32_1 = arith.constant 0 : i32
    return %c0_i32, %c0_i32_0 : i32, i32
  }
  func.func @transform_4(%arg0: i32) -> (i32, i32) {
    %c0_i32 = arith.constant 0 : i32
    %c0_i32_0 = arith.constant 0 : i32
    %c0_i32_1 = arith.constant 0 : i32
    return %c0_i32, %c0_i32_0 : i32, i32
  }
  func.func @transform_5(%arg0: i32) -> (i32, i32) {
    %c0_i32 = arith.constant 0 : i32
    %c0_i32_0 = arith.constant 0 : i32
    %c0_i32_1 = arith.constant 0 : i32
    return %c0_i32, %c0_i32_0 : i32, i32
  }
  func.func @transform_6(%arg0: i32) -> (i32, i32) {
    %c0_i32 = arith.constant 0 : i32
    %c0_i32_0 = arith.constant 0 : i32
    return %arg0, %c0_i32 : i32, i32
  }
}

</mosaic_0001>

<bundles_post_ra>
// kernel: lstm_dual_encoder_forward.1
= control target key start
LH: loop header
LB: loop body
LE: loop exit
PB: predicated region body
PF: predicated region fallthrough
CT: control target
= control target key end

     0   :  { %v5598_v1 = vmov 0   ;;  %vm178_vm0 = vcmask 523264   ;;  %v513_v57 = vlaneseq  ;;  %vm4398_vm1 = vmmov 0   ;;  %s5591_s1 = inlined_call_operand.vmem [shape: bf16[64,512], index: 1, kind: input, shape index: {}]   ;;  %s5592_s0 = inlined_call_operand.vmem [shape: bf16[1,128,64], index: 0, kind: input, shape index: {}]   ;;  %s5593_s2 = inlined_call_operand.vmem [shape: bf16[128,512], index: 2, kind: input, shape index: {}]   ;;  %s5594_s3 = inlined_call_operand.vmem [shape: f32[1,512], index: 3, kind: input, shape index: {}]   ;;  %s5595_s4 = inlined_call_operand.vmem [shape: bf16[128,128], index: 4, kind: input, shape index: {}]   ;;  %s5596_s5 = inlined_call_operand.<no memory space> [shape: f32[1,1], index: 5, kind: input, shape index: {}]   ;;  %s5597_s6 = inlined_call_operand.vmem [shape: f32[8,1], index: 6, kind: output, shape index: {}]  }
   0x1   :  { %v3956_v0 = vld [vmem:[%s5591_s1 + $0x4] ss:$16 sps:$4 sm:$0xff]   ;;  %235 = vmatprep.mubr.bf16.mxu0 %v5598_v1  ;;  %295 = vmatprep.mubr.bf16.mxu1 %v5598_v1  ;;  %v3958_v2 = vld [vmem:[%s5591_s1] ss:$16 sps:$4 sm:$0xff]   ;;  %v3972_v9 = vld [vmem:[%s5591_s1 + $0xc] ss:$16 sps:$4 sm:$0xff]  }
   0x2   :  { %203 = vmatprep.subr.bf16.mxu0 %v3956_v0  ;;  %3945 = vmatprep.subr.bf16.mxu1 %v3956_v0  ;;  %v3959_v3 = vld [vmem:[%s5591_s1 + $0x24] ss:$16 sps:$4 sm:$0xff]   ;;  %v3961_v4 = vld [vmem:[%s5591_s1 + $0x20] ss:$16 sps:$4 sm:$0xff]   ;;  %v3970_v12 = vld [vmem:[%s5591_s1 + $0x8] ss:$16 sps:$4 sm:$0xff]  }
   0x3   :  { %204 = vmatpush1.bf16.msra.mxu0 %v3958_v2  ;;  %3949 = vmatpush1.bf16.msra.mxu1 %v3958_v2  ;;  %v3962_v5 = vld [vmem:[%s5591_s1 + $0x44] ss:$16 sps:$4 sm:$0xff]   ;;  %v3964_v6 = vld [vmem:[%s5591_s1 + $0x40] ss:$16 sps:$4 sm:$0xff]   ;;  %v3975_v13 = vld [vmem:[%s5591_s1 + $0x2c] ss:$16 sps:$4 sm:$0xff]  }
   0x4   :  { %205 = vmatprep.subr.bf16.mxu0 %v3959_v3  ;;  %3946 = vmatprep.subr.bf16.mxu1 %v3959_v3  ;;  %v3965_v7 = vld [vmem:[%s5591_s1 + $0x64] ss:$16 sps:$4 sm:$0xff]   ;;  %v3967_v8 = vld [vmem:[%s5591_s1 + $0x60] ss:$16 sps:$4 sm:$0xff]   ;;  %v3973_v16 = vld [vmem:[%s5591_s1 + $0x28] ss:$16 sps:$4 sm:$0xff]  }
   0x5   :  { %v3968_v10 = vld [vmem:[%s5592_s0] sm:$0xff]   ;;  %v4469_v11 = vld [vmem:[%s5592_s0 + $0x30] sm:$0xff]   ;;  %v3980_v18 = vld [vmem:[%s5591_s1 + $0x4c] ss:$16 sps:$4 sm:$0xff]   ;;  %v4760_v58 = vshrl.u32 %v513_v57, 7  ;;  %vm3550_vm2 = vcmask 7168  }
   0x6   :  { %v4480_v14 = vld [vmem:[%s5593_s2 + $0x4] ss:$16 sps:$4 sm:$0xff]   ;;  %v4488_v15 = vld [vmem:[%s5593_s2] ss:$16 sps:$4 sm:$0xff]   ;;  %v3976_v19 = vld [vmem:[%s5592_s0 + $0x8] sm:$0xff]  }
   0x7   :  { %206 = vmatpush1.bf16.msra.mxu0 %v3961_v4  ;;  %3950 = vmatpush1.bf16.msra.mxu1 %v3961_v4  ;;  %v4497_v17 = vld [vmem:[%s5593_s2 + $0x24] ss:$16 sps:$4 sm:$0xff]   ;;  %v4510_v20 = vld [vmem:[%s5592_s0 + $0x38] sm:$0xff]   ;;  %v4523_v23 = vld [vmem:[%s5593_s2 + $0x20] ss:$16 sps:$4 sm:$0xff]   ;;  %v515_v59 = vsub.s32 0, %v4760_v58 }
   0x8   :  { %207 = vmatprep.subr.bf16.mxu0 %v3962_v5  ;;  %3947 = vmatprep.subr.bf16.mxu1 %v3962_v5  ;;  %v3978_v21 = vld [vmem:[%s5591_s1 + $0x48] ss:$16 sps:$4 sm:$0xff]   ;;  %v3983_v22 = vld [vmem:[%s5591_s1 + $0x6c] ss:$16 sps:$4 sm:$0xff]   ;;  %v4531_v24 = vld [vmem:[%s5593_s2 + $0x44] ss:$16 sps:$4 sm:$0xff]  }
   0x9   :  { %v3981_v25 = vld [vmem:[%s5591_s1 + $0x68] ss:$16 sps:$4 sm:$0xff]   ;;  %v4541_v26 = vld [vmem:[%s5593_s2 + $0xc] ss:$16 sps:$4 sm:$0xff]   ;;  %v4547_v27 = vld [vmem:[%s5593_s2 + $0x40] ss:$16 sps:$4 sm:$0xff]  }
   0xa   :  { %v3984_v28 = vld [vmem:[%s5592_s0 + $0x10] sm:$0xff]   ;;  %v4556_v29 = vld [vmem:[%s5593_s2 + $0x8] ss:$16 sps:$4 sm:$0xff]   ;;  %v4562_v30 = vld [vmem:[%s5593_s2 + $0x2c] ss:$16 sps:$4 sm:$0xff]   ;;  %v519_v63 = vsub.s32 1, %v4760_v58 }
   0xb   :  { %208 = vmatpush1.bf16.msra.mxu0 %v3964_v6  ;;  %3951 = vmatpush1.bf16.msra.mxu1 %v3964_v6  ;;  %v4568_v31 = vld [vmem:[%s5593_s2 + $0x64] ss:$16 sps:$4 sm:$0xff]   ;;  %v4575_v32 = vld [vmem:[%s5593_s2 + $0x60] ss:$16 sps:$4 sm:$0xff]   ;;  %v4582_v33 = vld [vmem:[%s5593_s2 + $0x28] ss:$16 sps:$4 sm:$0xff]  }
   0xc   :  { %209 = vmatprep.subr.bf16.mxu0 %v3965_v7  ;;  %3948 = vmatprep.subr.bf16.mxu1 %v3965_v7  ;;  %v4587_v34 = vld [vmem:[%s5593_s2 + $0x84] ss:$16 sps:$4 sm:$0xff]   ;;  %v4594_v35 = vld [vmem:[%s5593_s2 + $0x4c] ss:$16 sps:$4 sm:$0xff]   ;;  %v4604_v37 = vld [vmem:[%s5593_s2 + $0x80] ss:$16 sps:$4 sm:$0xff]  }
   0xd   :  { %v3994_v36 = vld [vmem:[%s5592_s0 + $0x18] sm:$0xff]   ;;  %v4616_v39 = vld [vmem:[%s5593_s2 + $0xa4] ss:$16 sps:$4 sm:$0xff]   ;;  %v4629_v41 = vld [vmem:[%s5593_s2 + $0xa0] ss:$16 sps:$4 sm:$0xff]  }
   0xe   :  { %v4609_v38 = vld [vmem:[%s5593_s2 + $0x48] ss:$16 sps:$4 sm:$0xff]   ;;  %v4621_v40 = vld [vmem:[%s5593_s2 + $0x6c] ss:$16 sps:$4 sm:$0xff]   ;;  %v4017_v43 = vld [vmem:[%s5593_s2 + $0xc4] ss:$16 sps:$4 sm:$0xff]  }
   0xf   :  { %210 = vmatpush1.bf16.msra.mxu0 %v3967_v8  ;;  %3952 = vmatpush1.bf16.msra.mxu1 %v3967_v8  ;;  %v4634_v42 = vld [vmem:[%s5593_s2 + $0x68] ss:$16 sps:$4 sm:$0xff]   ;;  %v4644_v44 = vld [vmem:[%s5593_s2 + $0x8c] ss:$16 sps:$4 sm:$0xff]   ;;  %v4004_v45 = vld [vmem:[%s5592_s0 + $0x20] sm:$0xff]  }
  0x10   :  { %316 = vmatprep.subr.bf16.mxu1 %v3972_v9  ;;  %734 = vmatprep.subr.bf16.mxu0 %v4480_v14  ;;  %v4015_v46 = vld [vmem:[%s5593_s2 + $0xc0] ss:$16 sps:$4 sm:$0xff]   ;;  %v4659_v47 = vld [vmem:[%s5593_s2 + $0x88] ss:$16 sps:$4 sm:$0xff]   ;;  %v4023_v48 = vld [vmem:[%s5593_s2 + $0xe4] ss:$16 sps:$4 sm:$0xff]  }
  0x11   :  { %v4667_v49 = vld [vmem:[%s5593_s2 + $0xac] ss:$16 sps:$4 sm:$0xff]   ;;  %v4021_v50 = vld [vmem:[%s5593_s2 + $0xe0] ss:$16 sps:$4 sm:$0xff]   ;;  %v4680_v51 = vld [vmem:[%s5593_s2 + $0xa8] ss:$16 sps:$4 sm:$0xff]  }
  0x12   :  { %3587 = vmatmul.mubr.msk.bf16.vlgmr.msra.gmra.mrb[0].mxu0 %vm178_vm0, %v3968_v10  ;;  %3593 = vmatmul.mubr.msk.bf16.vlgmr.msra.gmra.mrb[0].mxu1 %vm178_vm0, %v4469_v11  ;;  %v4687_v52 = vld [vmem:[%s5593_s2 + $0xcc] ss:$16 sps:$4 sm:$0xff]   ;;  %v4697_v54 = vld [vmem:[%s5593_s2 + $0xc8] ss:$16 sps:$4 sm:$0xff]   ;;  %v4766_v62 = vld [vmem:[%s5594_s3] sm:$0xf] }
  0x13   :  { %317 = vmatpush1.bf16.msra.mxu1 %v3970_v12  ;;  %245 = vmatprep.mubr.bf16.mxu0 %v5598_v1  ;;  %v4014_v53 = vld [vmem:[%s5592_s0 + $0x28] sm:$0xff]   ;;  %v4772_v9 = vrot.slane %v4766_v62, %v515_v59  ;;  %v4777_v12 = vrot.slane %v4766_v62, %v519_v63 }
  0x14   :  { %318 = vmatprep.subr.bf16.mxu1 %v3975_v13  ;;  %305 = vmatprep.mubr.bf16.mxu1 %v5598_v1  ;;  %v4702_v55 = vld [vmem:[%s5593_s2 + $0xec] ss:$16 sps:$4 sm:$0xff]   ;;  %v4712_v56 = vld [vmem:[%s5593_s2 + $0xe8] ss:$16 sps:$4 sm:$0xff]  }
  0x15   :  { %735 = vmatpush1.bf16.msra.mxu0 %v4488_v15 }
  0x16   :  { %736 = vmatprep.subr.bf16.mxu0 %v4497_v17 }
  0x17   :  { %319 = vmatpush1.bf16.msra.mxu1 %v3973_v16 }
  0x18   :  { %320 = vmatprep.subr.bf16.mxu1 %v3980_v18 }
  0x19   :  { %737 = vmatpush1.bf16.msra.mxu0 %v4523_v23 }
  0x1a   :  { %3588 = vmatmul.mubr.msk.bf16.gmra.mrb[4].mxu0 %vm178_vm0, %v3976_v19  ;;  %3594 = vmatmul.mubr.msk.bf16.gmra.mrb[4].mxu1 %vm178_vm0, %v4510_v20 }
  0x1b   :  { %321 = vmatpush1.bf16.msra.mxu1 %v3978_v21  ;;  %255 = vmatprep.mubr.bf16.mxu0 %v5598_v1 }
  0x1c   :  { %322 = vmatprep.subr.bf16.mxu1 %v3983_v22  ;;  %348 = vmatprep.mubr.bf16.mxu1 %v5598_v1 }
  0x1d   :  { %738 = vmatprep.subr.bf16.mxu0 %v4531_v24 }
  0x1e   :  { %739 = vmatpush1.bf16.msra.mxu0 %v4547_v27 }
  0x1f   :  { %323 = vmatpush1.bf16.msra.mxu1 %v3981_v25  ;;  %740 = vmatprep.subr.bf16.mxu0 %v4568_v31 }
  0x20   :  { %777 = vmatprep.subr.bf16.mxu1 %v4541_v26 }
  0x22   :  { %3589 = vmatmul.mubr.msk.bf16.gmra.mrb[8].mxu0 %vm178_vm0, %v3984_v28  ;;  %3595 = vmatmul.mubr.msk.bf16.vlgmr.msra.gmra.mrb[8].mxu1 %vm178_vm0, %v3968_v10 }
  0x23   :  { %778 = vmatpush1.bf16.msra.mxu1 %v4556_v29  ;;  %265 = vmatprep.mubr.bf16.mxu0 %v5598_v1 }
  0x24   :  { %358 = vmatprep.mubr.bf16.mxu1 %v5598_v1  ;;  %779 = vmatprep.subr.bf16.mxu1 %v4562_v30 }
  0x25   :  { %741 = vmatpush1.bf16.msra.mxu0 %v4575_v32 }
  0x26   :  { %742 = vmatprep.subr.bf16.mxu0 %v4587_v34 }
  0x27   :  { %780 = vmatpush1.bf16.msra.mxu1 %v4582_v33 }
  0x28   :  { %781 = vmatprep.subr.bf16.mxu1 %v4594_v35 }
  0x29   :  { %743 = vmatpush1.bf16.msra.mxu0 %v4604_v37 }
  0x2a   :  { %3590 = vmatmul.mubr.msk.bf16.gmra.mrb[12].mxu0 %vm178_vm0, %v3994_v36  ;;  %3596 = vmatmul.mubr.msk.bf16.gmra.mrb[12].mxu1 %vm178_vm0, %v3976_v19 }
  0x2b   :  { %275 = vmatprep.mubr.bf16.mxu0 %v5598_v1  ;;  %368 = vmatprep.mubr.bf16.mxu1 %v5598_v1 }
  0x2c   :  { %782 = vmatpush1.bf16.msra.mxu1 %v4609_v38  ;;  %744 = vmatprep.subr.bf16.mxu0 %v4616_v39 }
  0x2d   :  { %783 = vmatprep.subr.bf16.mxu1 %v4621_v40  ;;  %745 = vmatpush1.bf16.msra.mxu0 %v4629_v41 }
  0x2e   :  { %746 = vmatprep.subr.bf16.mxu0 %v4017_v43 }
  0x30   :  { %784 = vmatpush1.bf16.msra.mxu1 %v4634_v42 }
  0x31   :  { %785 = vmatprep.subr.bf16.mxu1 %v4644_v44  ;;  %747 = vmatpush1.bf16.msra.mxu0 %v4015_v46 }
  0x32   :  { %3591 = vmatmul.mubr.msk.bf16.gmra.mrb[16].mxu0 %vm178_vm0, %v4004_v45  ;;  %3597 = vmatmul.mubr.msk.bf16.gmra.mrb[16].mxu1 %vm178_vm0, %v3984_v28 }
  0x33   :  { %285 = vmatprep.mubr.bf16.mxu0 %v5598_v1  ;;  %378 = vmatprep.mubr.bf16.mxu1 %v5598_v1 }
  0x34   :  { %786 = vmatpush1.bf16.msra.mxu1 %v4659_v47  ;;  %748 = vmatprep.subr.bf16.mxu0 %v4023_v48 }
  0x35   :  { %787 = vmatprep.subr.bf16.mxu1 %v4667_v49  ;;  %749 = vmatpush1.bf16.msra.mxu0 %v4021_v50 }
  0x36   :  { %1098 = vmatprep.subr.bf16.mxu0 %v4480_v14 }
  0x38   :  { %788 = vmatpush1.bf16.msra.mxu1 %v4680_v51 }
  0x39   :  { %789 = vmatprep.subr.bf16.mxu1 %v4687_v52 }
  0x3a   :  { %3592 = vmatmul.mubr.msk.bf16.gmra.mrb[20].mxu0 %vm178_vm0, %v4014_v53  ;;  %3598 = vmatmul.mubr.msk.bf16.gmra.mrb[20].mxu1 %vm178_vm0, %v3994_v36 }
  0x3b   :  { %388 = vmatprep.mubr.bf16.mxu1 %v5598_v1  ;;  %766 = vmatprep.mubr.bf16.mxu0 %v5598_v1 }
  0x3c   :  { %790 = vmatpush1.bf16.msra.mxu1 %v4697_v54 }
  0x3d   :  { %791 = vmatprep.subr.bf16.mxu1 %v4702_v55 }
  0x40   :  { %792 = vmatpush1.bf16.msra.mxu1 %v4712_v56 }
  0x41   :  { %1141 = vmatprep.subr.bf16.mxu1 %v4541_v26 }
  0x42   :  { %3599 = vmatmul.mubr.msk.bf16.gmra.mrb[24].mxu1 %vm178_vm0, %v4004_v45  ;;  %767 = vmatmul.mubr.bf16.vlgmr.msra.gmra.mrb[24].mxu0 %v5598_v1 }
  0x43   :  { %398 = vmatprep.mubr.bf16.mxu1 %v5598_v1  ;;  %1099 = vmatpush1.bf16.msra.mxu0 %v4488_v15 }
  0x44   :  { %1100 = vmatprep.subr.bf16.mxu0 %v4497_v17  ;;  %1130 = vmatprep.mubr.bf16.mxu0 %v5598_v1 }
  0x47   :  { %1101 = vmatpush1.bf16.msra.mxu0 %v4523_v23 }
  0x48   :  { %1102 = vmatprep.subr.bf16.mxu0 %v4531_v24 }
  0x4a   :  { %3600 = vmatmul.mubr.msk.bf16.gmra.mrb[28].mxu1 %vm178_vm0, %v4014_v53 }
  0x4b   :  { %408 = vmatprep.mubr.bf16.mxu1 %v5598_v1  ;;  %1103 = vmatpush1.bf16.msra.mxu0 %v4547_v27 }
  0x4c   :  { %1104 = vmatprep.subr.bf16.mxu0 %v4568_v31 }
  0x4f   :  { %1105 = vmatpush1.bf16.msra.mxu0 %v4575_v32 }
  0x50   :  { %1106 = vmatprep.subr.bf16.mxu0 %v4587_v34 }
  0x52   :  { %3601 = vmatmul.mubr.msk.bf16.gmra.mrb[32].mxu1 %vm178_vm0, %v4469_v11 }
  0x53   :  { %418 = vmatprep.mubr.bf16.mxu1 %v5598_v1  ;;  %1107 = vmatpush1.bf16.msra.mxu0 %v4604_v37 }
  0x54   :  { %1108 = vmatprep.subr.bf16.mxu0 %v4616_v39 }
  0x57   :  { %1109 = vmatpush1.bf16.msra.mxu0 %v4629_v41 }
  0x58   :  { %1110 = vmatprep.subr.bf16.mxu0 %v4017_v43 }
  0x5a   :  { %3602 = vmatmul.mubr.msk.bf16.gmra.mrb[36].mxu1 %vm178_vm0, %v4510_v20 }
  0x5b   :  { %809 = vmatprep.mubr.bf16.mxu1 %v5598_v1  ;;  %1111 = vmatpush1.bf16.msra.mxu0 %v4015_v46 }
  0x5c   :  { %1112 = vmatprep.subr.bf16.mxu0 %v4023_v48 }
  0x5f   :  { %1113 = vmatpush1.bf16.msra.mxu0 %v4021_v50 }
  0x62   :  { %810 = vmatmul.mubr.bf16.vlgmr.msra.gmra.mrb[40].mxu1 %v5598_v1 }
  0x63   :  { %1142 = vmatpush1.bf16.msra.mxu1 %v4556_v29  ;;  %1173 = vmatprep.mubr.bf16.mxu1 %v5598_v1 }
  0x64   :  { %1143 = vmatprep.subr.bf16.mxu1 %v4562_v30 }
  0x67   :  { %1144 = vmatpush1.bf16.msra.mxu1 %v4582_v33 }
  0x68   :  { %1145 = vmatprep.subr.bf16.mxu1 %v4594_v35 }
  0x6b   :  { %1146 = vmatpush1.bf16.msra.mxu1 %v4609_v38 }
  0x6c   :  { %1147 = vmatprep.subr.bf16.mxu1 %v4621_v40 }
  0x6f   :  { %1148 = vmatpush1.bf16.msra.mxu1 %v4634_v42 }
  0x70   :  { %1149 = vmatprep.subr.bf16.mxu1 %v4644_v44 }
  0x73   :  { %1150 = vmatpush1.bf16.msra.mxu1 %v4659_v47 }
  0x74   :  { %1151 = vmatprep.subr.bf16.mxu1 %v4667_v49 }
  0x77   :  { %1152 = vmatpush1.bf16.msra.mxu1 %v4680_v51 }
  0x78   :  { %1153 = vmatprep.subr.bf16.mxu1 %v4687_v52 }
  0x7b   :  { %1154 = vmatpush1.bf16.msra.mxu1 %v4697_v54 }
  0x7c   :  { %1155 = vmatprep.subr.bf16.mxu1 %v4702_v55 }
  0x7f   :  { %1156 = vmatpush1.bf16.msra.mxu1 %v4712_v56 }
  0xe5   :  { %v297_v60 = vpop.f32.mrb[0].mxu1  ;;  %v237_v61 = vpop.f32.mrb[0].mxu0 }
  0xe6   :  { %v299_v0 = vpop.f32.mrb[1].mxu1  ;;  %v239_v2 = vpop.f32.mrb[1].mxu0 }
  0xe7   :  { %v301_v3 = vpop.f32.mrb[2].mxu1  ;;  %v241_v4 = vpop.f32.mrb[2].mxu0 }
  0xe8   :  { %v453_v5 = vpack.c.bf16 %v301_v3, %v297_v60  ;;  %v303_v6 = vpop.f32.mrb[3].mxu1  ;;  %v4769_v7 = vpack.c.bf16 %v241_v4, %v237_v61  ;;  %v243_v8 = vpop.f32.mrb[3].mxu0 }
  0xe9   :  { %v454_v10 = vpack.c.bf16 %v303_v6, %v299_v0  ;;  %v4774_v11 = vpack.c.bf16 %v243_v8, %v239_v2 }
  0xea   :  { %v2709_v13 = vunpack.c.l.bf16 %v453_v5  ;;  %v2713_v14 = vunpack.c.h.bf16 %v453_v5 }
  0xeb   :  { %v2710_v15 = vunpack.c.l.bf16 %v454_v10  ;;  %v2714_v16 = vunpack.c.h.bf16 %v454_v10 }
  0xec   :  { %v4780_v17 = vadd.f32 %v2709_v13, %v4772_v9  ;;  %v4783_v18 = vadd.f32 %v2713_v14, %v4772_v9 }
  0xed   :  { %v307_v19 = vpop.f32.mrb[4].mxu1  ;;  %v247_v20 = vpop.f32.mrb[4].mxu0  ;;  %v4786_v21 = vadd.f32 %v2710_v15, %v4777_v12  ;;  %v4789_v22 = vadd.f32 %v2714_v16, %v4777_v12 }
  0xee   :  { %5600 = vst [vmem:[#allocation6_spill] sm:$0xff] %v4780_v17  ;;  %5601 = vst [vmem:[#allocation7_spill] sm:$0xff] %v4783_v18  ;;  %v309_v23 = vpop.f32.mrb[5].mxu1  ;;  %v249_v24 = vpop.f32.mrb[5].mxu0 }
  0xef   :  { %5602 = vst [vmem:[#allocation8_spill] sm:$0xff] %v4786_v21  ;;  %5603 = vst [vmem:[#allocation9_spill] sm:$0xff] %v4789_v22  ;;  %v311_v25 = vpop.f32.mrb[6].mxu1  ;;  %v251_v26 = vpop.f32.mrb[6].mxu0 }
  0xf0   :  { %v457_v27 = vpack.c.bf16 %v311_v25, %v307_v19  ;;  %v313_v28 = vpop.f32.mrb[7].mxu1  ;;  %v433_v29 = vpack.c.bf16 %v251_v26, %v247_v20  ;;  %v253_v31 = vpop.f32.mrb[7].mxu0 }
  0xf1   :  { %v458_v32 = vpack.c.bf16 %v313_v28, %v309_v23  ;;  %v434_v34 = vpack.c.bf16 %v253_v31, %v249_v24  ;;  %v523_v31 = vsub.s32 2, %v4760_v58 }
  0xf2   :  { %v3073_v36 = vunpack.c.l.bf16 %v457_v27  ;;  %v3077_v37 = vunpack.c.h.bf16 %v457_v27  ;;  %v889_v39 = vunpack.c.l.bf16 %v433_v29  ;;  %v893_v41 = vunpack.c.h.bf16 %v433_v29 }
  0xf3   :  { %v3074_v43 = vunpack.c.l.bf16 %v458_v32  ;;  %v3078_v45 = vunpack.c.h.bf16 %v458_v32  ;;  %v890_v46 = vunpack.c.l.bf16 %v434_v34  ;;  %v894_v48 = vunpack.c.h.bf16 %v434_v34 }
  0xf4   :  { %v4792_v50 = vadd.f32 %v889_v39, %v4772_v9  ;;  %v4795_v53 = vadd.f32 %v893_v41, %v4772_v9  ;;  %v4798_v57 = vadd.f32 %v3073_v36, %v4772_v9  ;;  %v4801_v59 = vadd.f32 %v3077_v37, %v4772_v9 }
  0xf5   :  { %v350_v60 = vpop.f32.mrb[8].mxu1  ;;  %v257_v61 = vpop.f32.mrb[8].mxu0  ;;  %v4804_v63 = vadd.f32 %v890_v46, %v4777_v12  ;;  %v4807_v0 = vadd.f32 %v894_v48, %v4777_v12  ;;  %v4810_v2 = vadd.f32 %v3074_v43, %v4777_v12  ;;  %v4813_v3 = vadd.f32 %v3078_v45, %v4777_v12 }
  0xf6   :  { %5604 = vst [vmem:[#allocation10_spill] sm:$0xff] %v4798_v57  ;;  %5605 = vst [vmem:[#allocation11_spill] sm:$0xff] %v4801_v59  ;;  %v352_v4 = vpop.f32.mrb[9].mxu1  ;;  %v259_v5 = vpop.f32.mrb[9].mxu0  ;;  %v527_v32 = vsub.s32 3, %v4760_v58 }
  0xf7   :  { %5606 = vst [vmem:[#allocation12_spill] sm:$0xff] %v4810_v2  ;;  %5607 = vst [vmem:[#allocation13_spill] sm:$0xff] %v4813_v3  ;;  %v354_v6 = vpop.f32.mrb[10].mxu1  ;;  %v261_v8 = vpop.f32.mrb[10].mxu0 }
  0xf8   :  { %v4815_v10 = vpack.c.bf16 %v354_v6, %v350_v60  ;;  %v356_v13 = vpop.f32.mrb[11].mxu1  ;;  %v437_v14 = vpack.c.bf16 %v261_v8, %v257_v61  ;;  %v263_v15 = vpop.f32.mrb[11].mxu0  ;;  %v4837_v58 = vrot.slane %v4766_v62, %v527_v32 }
  0xf9   :  { %v4817_v16 = vpack.c.bf16 %v356_v13, %v352_v4  ;;  %v438_v19 = vpack.c.bf16 %v263_v15, %v259_v5  ;;  %v4834_v5 = vrot.slane %v4766_v62, %v523_v31 }
  0xfa   :  { %v1253_v20 = vunpack.c.l.bf16 %v437_v14  ;;  %v1257_v23 = vunpack.c.h.bf16 %v437_v14 }
  0xfb   :  { %v1254_v24 = vunpack.c.l.bf16 %v438_v19  ;;  %v1258_v25 = vunpack.c.h.bf16 %v438_v19 }
  0xfc   :  { %v4820_v26 = vadd.f32 %v1253_v20, %v4772_v9  ;;  %v4823_v27 = vadd.f32 %v1257_v23, %v4772_v9 }
  0xfd   :  { %v360_v28 = vpop.f32.mrb[12].mxu1  ;;  %v267_v29 = vpop.f32.mrb[12].mxu0  ;;  %v4828_v34 = vadd.f32 %v1254_v24, %v4777_v12  ;;  %v4831_v36 = vadd.f32 %v1258_v25, %v4777_v12 }
  0xfe   :  { %v362_v37 = vpop.f32.mrb[13].mxu1  ;;  %v269_v39 = vpop.f32.mrb[13].mxu0 }
  0xff   :  { %v364_v41 = vpop.f32.mrb[14].mxu1  ;;  %v271_v43 = vpop.f32.mrb[14].mxu0 }
 0x100   :  { %v435_v45 = vpack.c.bf16 %v364_v41, %v360_v28  ;;  %v366_v46 = vpop.f32.mrb[15].mxu1  ;;  %v441_v48 = vpack.c.bf16 %v271_v43, %v267_v29  ;;  %v273_v60 = vpop.f32.mrb[15].mxu0 }
 0x101   :  { %v436_v61 = vpack.c.bf16 %v366_v46, %v362_v37  ;;  %v442_v4 = vpack.c.bf16 %v273_v60, %v269_v39 }
 0x102   :  { %v891_v6 = vunpack.c.l.bf16 %v435_v45  ;;  %v895_v8 = vunpack.c.h.bf16 %v435_v45  ;;  %v1617_v13 = vunpack.c.l.bf16 %v441_v48  ;;  %v1621_v14 = vunpack.c.h.bf16 %v441_v48 }
 0x103   :  { %v892_v15 = vunpack.c.l.bf16 %v436_v61  ;;  %v896_v19 = vunpack.c.h.bf16 %v436_v61  ;;  %v1618_v20 = vunpack.c.l.bf16 %v442_v4  ;;  %v1622_v23 = vunpack.c.h.bf16 %v442_v4 }
 0x104   :  { %v4840_v24 = vadd.f32 %v891_v6, %v4834_v5  ;;  %v4843_v25 = vadd.f32 %v895_v8, %v4834_v5  ;;  %v4846_v28 = vadd.f32 %v1617_v13, %v4772_v9  ;;  %v4849_v62 = vadd.f32 %v1621_v14, %v4772_v9 }
 0x105   :  { %v370_v29 = vpop.f32.mrb[16].mxu1  ;;  %v277_v31 = vpop.f32.mrb[16].mxu0  ;;  %v4852_v32 = vadd.f32 %v892_v15, %v4837_v58  ;;  %v4855_v37 = vadd.f32 %v896_v19, %v4837_v58  ;;  %v4858_v39 = vadd.f32 %v1618_v20, %v4777_v12  ;;  %v4861_v41 = vadd.f32 %v1622_v23, %v4777_v12 }
 0x106   :  { %5608 = vst [vmem:[#allocation14_spill] sm:$0xff] %v4849_v62  ;;  %v372_v43 = vpop.f32.mrb[17].mxu1  ;;  %v279_v45 = vpop.f32.mrb[17].mxu0  ;;  %v504_v8 = vunpack.c.l.bf16 %v4769_v7  ;;  %v505_v13 = vunpack.c.l.bf16 %v4774_v11 }
 0x107   :  { %5609 = vst [vmem:[#allocation15_spill] sm:$0xff] %v4858_v39  ;;  %5610 = vst [vmem:[#allocation16_spill] sm:$0xff] %v4861_v41  ;;  %v374_v46 = vpop.f32.mrb[18].mxu1  ;;  %v281_v48 = vpop.f32.mrb[18].mxu0 }
 0x108   :  { %v439_v60 = vpack.c.bf16 %v374_v46, %v370_v29  ;;  %v376_v61 = vpop.f32.mrb[19].mxu1  ;;  %v445_v4 = vpack.c.bf16 %v281_v48, %v277_v31  ;;  %v283_v6 = vpop.f32.mrb[19].mxu0 }
 0x109   :  { %v440_v14 = vpack.c.bf16 %v376_v61, %v372_v43  ;;  %v446_v15 = vpack.c.bf16 %v283_v6, %v279_v45 }
 0x10a   :  { %v1255_v19 = vunpack.c.l.bf16 %v439_v60  ;;  %v1259_v20 = vunpack.c.h.bf16 %v439_v60  ;;  %v1981_v1 = vunpack.c.l.bf16 %v445_v4  ;;  %v1985_v3 = vunpack.c.h.bf16 %v445_v4 }
 0x10b   :  { %v1256_v23 = vunpack.c.l.bf16 %v440_v14  ;;  %v1260_v59 = vunpack.c.h.bf16 %v440_v14  ;;  %v1982_v2 = vunpack.c.l.bf16 %v446_v15  ;;  %v1986_v57 = vunpack.c.h.bf16 %v446_v15 }
 0x10c   :  { %v4866_v22 = vadd.f32 %v1255_v19, %v4834_v5  ;;  %v4869_v29 = vadd.f32 %v1259_v20, %v4834_v5  ;;  %v4872_v31 = vadd.f32 %v1981_v1, %v4772_v9  ;;  %v4875_v43 = vadd.f32 %v1985_v3, %v4772_v9 }
 0x10d   :  { %v380_v45 = vpop.f32.mrb[20].mxu1  ;;  %v287_v46 = vpop.f32.mrb[20].mxu0  ;;  %v4878_v48 = vadd.f32 %v1256_v23, %v4837_v58  ;;  %v4881_v60 = vadd.f32 %v1260_v59, %v4837_v58  ;;  %v4884_v61 = vadd.f32 %v1982_v2, %v4777_v12  ;;  %v4887_v4 = vadd.f32 %v1986_v57, %v4777_v12 }
 0x10e   :  { %5611 = vst [vmem:[#allocation17_spill] sm:$0xff] %v4872_v31  ;;  %5612 = vst [vmem:[#allocation18_spill] sm:$0xff] %v4875_v43  ;;  %v382_v6 = vpop.f32.mrb[21].mxu1  ;;  %v289_v1 = vpop.f32.mrb[21].mxu0  ;;  %v508_v3 = vunpack.c.h.bf16 %v4769_v7  ;;  %v509_v19 = vunpack.c.h.bf16 %v4774_v11  ;;  %v533_v2 = vadd.f32 %v4772_v9, %v504_v8  ;;  %v534_v43 = vadd.f32 %v4777_v12, %v505_v13 }
 0x10f   :  { %5613 = vst [vmem:[#allocation19_spill] sm:$0xff] %v4884_v61  ;;  %5614 = vst [vmem:[#allocation20_spill] sm:$0xff] %v4887_v4  ;;  %v384_v14 = vpop.f32.mrb[22].mxu1  ;;  %v291_v15 = vpop.f32.mrb[22].mxu0 }
 0x110   :  { %v443_v20 = vpack.c.bf16 %v384_v14, %v380_v45  ;;  %v386_v23 = vpop.f32.mrb[23].mxu1  ;;  %v449_v18 = vpack.c.bf16 %v291_v15, %v287_v46  ;;  %v293_v21 = vpop.f32.mrb[23].mxu0 }
 0x111   :  { %v444_v59 = vpack.c.bf16 %v386_v23, %v382_v6  ;;  %v450_v17 = vpack.c.bf16 %v293_v21, %v289_v1 }
 0x112   :  { %v1619_v57 = vunpack.c.l.bf16 %v443_v20  ;;  %v1623_v4 = vunpack.c.h.bf16 %v443_v20  ;;  %v2345_v61 = vunpack.c.l.bf16 %v449_v18  ;;  %v2349_v31 = vunpack.c.h.bf16 %v449_v18 }
 0x113   :  { %v1620_v41 = vunpack.c.l.bf16 %v444_v59  ;;  %v1624_v62 = vunpack.c.h.bf16 %v444_v59  ;;  %v2346_v39 = vunpack.c.l.bf16 %v450_v17  ;;  %v2350_v7 = vunpack.c.h.bf16 %v450_v17 }
 0x114   :  { %v4894_v11 = vadd.f32 %v1619_v57, %v4834_v5  ;;  %v4897_v45 = vadd.f32 %v1623_v4, %v4834_v5  ;;  %v4900_v21 = vadd.f32 %v2345_v61, %v4772_v9  ;;  %v4903_v8 = vadd.f32 %v2349_v31, %v4772_v9 }
 0x115   :  { %v390_v13 = vpop.f32.mrb[24].mxu1  ;;  %v768_v46 = vpop.f32.mrb[24].mxu0  ;;  %v4906_v18 = vadd.f32 %v1620_v41, %v4837_v58  ;;  %v4909_v6 = vadd.f32 %v1624_v62, %v4837_v58  ;;  %v4912_v17 = vadd.f32 %v2346_v39, %v4777_v12  ;;  %v4915_v4 = vadd.f32 %v2350_v7, %v4777_v12 }
 0x116   :  { %5615 = vst [vmem:[#allocation21_spill] sm:$0xff] %v4900_v21  ;;  %5616 = vst [vmem:[#allocation22_spill] sm:$0xff] %v4903_v8  ;;  %v820_v1 = vadd.f32 %v768_v46, %v533_v2  ;;  %v392_v61 = vpop.f32.mrb[25].mxu1  ;;  %v770_v14 = vpop.f32.mrb[25].mxu0  ;;  %v537_v31 = vadd.f32 %v4772_v9, %v508_v3  ;;  %v538_v41 = vadd.f32 %v4777_v12, %v509_v19 }
 0x117   :  { %5617 = vst [vmem:[#allocation23_spill] sm:$0xff] %v4909_v6  ;;  %5618 = vst [vmem:[#allocation24_spill] sm:$0xff] %v4912_v17  ;;  %v821_v15 = vadd.f32 %v770_v14, %v534_v43  ;;  %v394_v20 = vpop.f32.mrb[26].mxu1  ;;  %v772_v23 = vpop.f32.mrb[26].mxu0 }
 0x118   :  { %5619 = vst [vmem:[#allocation25_spill] sm:$0xff] %v4915_v4  ;;  %v447_v59 = vpack.c.bf16 %v394_v20, %v390_v13  ;;  %v824_v57 = vadd.f32 %v772_v23, %v537_v31  ;;  %v396_v62 = vpop.f32.mrb[27].mxu1  ;;  %v774_v8 = vpop.f32.mrb[27].mxu0 }
 0x119   :  { %v448_v21 = vpack.c.bf16 %v396_v62, %v392_v61  ;;  %v825_v39 = vadd.f32 %v774_v8, %v538_v41  ;;  %v3635_v8 = vmul.f32 -1.442695, %v820_v1  ;;  %v3637_v14 = vmul.f32 -1.442695, %v821_v15 }
 0x11a   :  { %v1983_v17 = vunpack.c.l.bf16 %v447_v59  ;;  %v1987_v6 = vunpack.c.h.bf16 %v447_v59  ;;  %v3636_v41 = vmul.f32 -1.442695, %v824_v57 }
 0x11b   :  { %v1984_v7 = vunpack.c.l.bf16 %v448_v21  ;;  %v1988_v4 = vunpack.c.h.bf16 %v448_v21  ;;  %v3638_v31 = vmul.f32 -1.442695, %v825_v39  ;;  %4140 = vpow2.f32 %v3635_v8 }
 0x11c   :  { %v4920_v2 = vadd.f32 %v1983_v17, %v4834_v5  ;;  %v4923_v9 = vadd.f32 %v1987_v6, %v4834_v5  ;;  %4142 = vpow2.f32 %v3637_v14 }
 0x11d   :  { %v400_v43 = vpop.f32.mrb[28].mxu1  ;;  %v4926_v3 = vadd.f32 %v1984_v7, %v4837_v58  ;;  %v4929_v12 = vadd.f32 %v1988_v4, %v4837_v58  ;;  %4144 = vpow2.f32 %v3638_v31 }
 0x11e   :  { %5620 = vst [vmem:[#allocation26_spill] sm:$0xff] %v4923_v9  ;;  %v402_v19 = vpop.f32.mrb[29].mxu1  ;;  %4146 = vpow2.f32 %v3636_v41 }
 0x11f   :  { %5621 = vst [vmem:[#allocation27_spill] sm:$0xff] %v4926_v3  ;;  %5622 = vst [vmem:[#allocation28_spill] sm:$0xff] %v4929_v12  ;;  %v404_v13 = vpop.f32.mrb[30].mxu1 }
 0x120   :  { %v451_v46 = vpack.c.bf16 %v404_v13, %v400_v43  ;;  %v406_v61 = vpop.f32.mrb[31].mxu1 }
 0x121   :  { %v452_v21 = vpack.c.bf16 %v406_v61, %v402_v19 }
 0x122   :  { %v2347_v17 = vunpack.c.l.bf16 %v451_v46  ;;  %v2351_v20 = vunpack.c.h.bf16 %v451_v46 }
 0x123   :  { %v2348_v23 = vunpack.c.l.bf16 %v452_v21  ;;  %v2352_v6 = vunpack.c.h.bf16 %v452_v21 }
 0x124   :  { %v4932_v59 = vadd.f32 %v2347_v17, %v4834_v5  ;;  %v4935_v4 = vadd.f32 %v2351_v20, %v4834_v5 }
 0x125   :  { %v410_v62 = vpop.f32.mrb[32].mxu1  ;;  %v4938_v1 = vadd.f32 %v2348_v23, %v4837_v58  ;;  %v4941_v15 = vadd.f32 %v2352_v6, %v4837_v58  ;;  %v4141_v23 = vpop.eup %4140 }
 0x126   :  { %5623 = vst [vmem:[#allocation29_spill] sm:$0xff] %v4932_v59  ;;  %5624 = vst [vmem:[#allocation30_spill] sm:$0xff] %v4935_v4  ;;  %v412_v39 = vpop.f32.mrb[33].mxu1  ;;  %v4143_v41 = vpop.eup %4142 }
 0x127   :  { %5625 = vst [vmem:[#allocation31_spill] sm:$0xff] %v4938_v1  ;;  %5626 = vst [vmem:[#allocation32_spill] sm:$0xff] %v4941_v15  ;;  %v414_v7 = vpop.f32.mrb[34].mxu1 }
 0x128   :  { %v455_v43 = vpack.c.bf16 %v414_v7, %v410_v62  ;;  %v416_v57 = vpop.f32.mrb[35].mxu1  ;;  %v506_v7 = vunpack.c.l.bf16 %v4815_v10 }
 0x129   :  { %v456_v19 = vpack.c.bf16 %v416_v57, %v412_v39  ;;  %v4145_v39 = vpop.eup %4144 }
 0x12a   :  { %v2711_v13 = vunpack.c.l.bf16 %v455_v43  ;;  %v2715_v8 = vunpack.c.h.bf16 %v455_v43  ;;  %v507_v43 = vunpack.c.l.bf16 %v4817_v16  ;;  %v847_v15 = vadd.f32 1.0, %v4145_v39 }
 0x12b   :  { %v2712_v46 = vunpack.c.l.bf16 %v456_v19  ;;  %v2716_v61 = vunpack.c.h.bf16 %v456_v19  ;;  %v535_v59 = vadd.f32 %v4834_v5, %v506_v7 }
 0x12c   :  { %v4944_v14 = vadd.f32 %v2711_v13, %v4834_v5  ;;  %v4947_v21 = vadd.f32 %v2715_v8, %v4834_v5  ;;  %v834_v13 = vadd.f32 1.0, %v4141_v23  ;;  %v536_v12 = vadd.f32 %v4837_v58, %v507_v43 }
 0x12d   :  { %v420_v17 = vpop.f32.mrb[36].mxu1  ;;  %v4950_v20 = vadd.f32 %v2712_v46, %v4837_v58  ;;  %v4953_v31 = vadd.f32 %v2716_v61, %v4837_v58  ;;  %v510_v46 = vunpack.c.h.bf16 %v4815_v10 }
 0x12e   :  { %5627 = vst [vmem:[#allocation33_spill] sm:$0xff] %v4944_v14  ;;  %5628 = vst [vmem:[#allocation34_spill] sm:$0xff] %v4947_v21  ;;  %v422_v6 = vpop.f32.mrb[37].mxu1  ;;  %v4147_v21 = vpop.eup %4146  ;;  %4148 = vrcp.f32 %v834_v13 }
 0x12f   :  { %5629 = vst [vmem:[#allocation35_spill] sm:$0xff] %v4950_v20  ;;  %5630 = vst [vmem:[#allocation36_spill] sm:$0xff] %v4953_v31  ;;  %v424_v62 = vpop.f32.mrb[38].mxu1  ;;  %v846_v20 = vadd.f32 1.0, %v4143_v41  ;;  %v511_v31 = vunpack.c.h.bf16 %v4817_v16  ;;  %v835_v10 = vadd.f32 1.0, %v4147_v21  ;;  %v539_v7 = vadd.f32 %v4834_v5, %v510_v46 }
 0x130   :  { %v459_v57 = vpack.c.bf16 %v424_v62, %v420_v17  ;;  %v426_v19 = vpop.f32.mrb[39].mxu1 }
 0x131   :  { %v460_v8 = vpack.c.bf16 %v426_v19, %v422_v6  ;;  %4150 = vrcp.f32 %v846_v20 }
 0x132   :  { %v3075_v14 = vunpack.c.l.bf16 %v459_v57  ;;  %v3079_v61 = vunpack.c.h.bf16 %v459_v57  ;;  %4152 = vrcp.f32 %v847_v15  ;;  %v540_v57 = vadd.f32 %v4837_v58, %v511_v31 }
 0x133   :  { %v3076_v4 = vunpack.c.l.bf16 %v460_v8  ;;  %v3080_v1 = vunpack.c.h.bf16 %v460_v8 }
 0x134   :  { %v4962_v17 = vadd.f32 %v3075_v14, %v4834_v5  ;;  %v4965_v23 = vadd.f32 %v3079_v61, %v4834_v5 }
 0x135   :  { %v811_v6 = vpop.f32.mrb[40].mxu1  ;;  %v4968_v41 = vadd.f32 %v3076_v4, %v4837_v58  ;;  %v4971_v16 = vadd.f32 %v3080_v1, %v4837_v58 }
 0x136   :  { %5631 = vst [vmem:[#allocation37_spill] sm:$0xff] %v4962_v17  ;;  %5632 = vst [vmem:[#allocation38_spill] sm:$0xff] %v4965_v23  ;;  %v822_v62 = vadd.f32 %v811_v6, %v535_v59  ;;  %v813_v39 = vpop.f32.mrb[41].mxu1 }
 0x137   :  { %5633 = vst [vmem:[#allocation39_spill] sm:$0xff] %v4968_v41  ;;  %5634 = vst [vmem:[#allocation40_spill] sm:$0xff] %v4971_v16  ;;  %v823_v14 = vadd.f32 %v813_v39, %v536_v12  ;;  %v815_v43 = vpop.f32.mrb[42].mxu1 }
 0x138   :  { %4154 = vtanh.f32 %v822_v62  ;;  %v826_v19 = vadd.f32 %v815_v43, %v539_v7  ;;  %v817_v21 = vpop.f32.mrb[43].mxu1  ;;  %v4149_v20 = vpop.eup %4148 }
 0x139   :  { %4156 = vrcp.f32 %v835_v10  ;;  %v3639_v13 = vmul.f32 -1.442695, %v823_v14  ;;  %v827_v4 = vadd.f32 %v817_v21, %v540_v57 }
 0x13a   :  { %4158 = vtanh.f32 %v826_v19 }
 0x13b   :  { %4160 = vpow2.f32 %v3639_v13  ;;  %v3640_v1 = vmul.f32 -1.442695, %v827_v4  ;;  %v4151_v59 = vpop.eup %4150 }
 0x13c   :  { %v4153_v8 = vpop.eup %4152  ;;  %v868_v15 = vmul.f32 0.0, %v4151_v59  ;;  %v4986_v59 = vld [vmem:[%s5593_s2 + $0x4] ss:$16 sps:$4 sm:$0xff]  }
 0x13d   :  { %4162 = vpow2.f32 %v3640_v1  ;;  %v869_v58 = vmul.f32 0.0, %v4153_v8  ;;  %v4991_v8 = vld [vmem:[%s5593_s2 + $0xc] ss:$16 sps:$4 sm:$0xff]   ;;  %1462 = vmatprep.subr.bf16.mxu0 %v4986_v59 }
 0x13e   :  { %1505 = vmatprep.subr.bf16.mxu1 %v4991_v8 }
 0x142   :  { %v4155_v61 = vpop.eup %4154 }
 0x143   :  { %v4157_v5 = vpop.eup %4156  ;;  %v870_v12 = vmul.f32 %v4155_v61, %v4149_v20  ;;  %v5635_v20 = vmov 0   ;;  %v4996_v61 = vld [vmem:[%s5593_s2] ss:$16 sps:$4 sm:$0xff]  }
 0x144   :  { %v4159_v46 = vpop.eup %4158 }
 0x145   :  { %v4161_v6 = vpop.eup %4160  ;;  %v4975_v31 = vadd.f32 %v870_v12, %v868_v15  ;;  %v871_v62 = vmul.f32 %v4159_v46, %v4157_v5  ;;  %v5001_v5 = vld [vmem:[%s5593_s2 + $0x8] ss:$16 sps:$4 sm:$0xff]   ;;  %v5010_v15 = vld [vmem:[%s5593_s2 + $0x24] ss:$16 sps:$4 sm:$0xff]   ;;  %v5016_v12 = vld [vmem:[%s5593_s2 + $0x20] ss:$16 sps:$4 sm:$0xff]  }
 0x146   :  { %v860_v10 = vadd.f32 1.0, %v4161_v6  ;;  %v5024_v46 = vld [vmem:[%s5593_s2 + $0x44] ss:$16 sps:$4 sm:$0xff]  }
 0x147   :  { %v4163_v39 = vpop.eup %4162  ;;  %4164 = vtanh.f32 %v4975_v31  ;;  %v4978_v7 = vadd.f32 %v871_v62, %v869_v58  ;;  %v5063_v6 = vld [vmem:[%s5593_s2 + $0xa4] ss:$16 sps:$4 sm:$0xff]  }
 0x148   :  { %4166 = vrcp.f32 %v860_v10  ;;  %v861_v14 = vadd.f32 1.0, %v4163_v39 }
 0x149   :  { %4168 = vtanh.f32 %v4978_v7 }
 0x14a   :  { %4170 = vrcp.f32 %v861_v14 }
 0x151   :  { %v4165_v43 = vpop.eup %4164 }
 0x152   :  { %v4167_v57 = vpop.eup %4166 }
 0x153   :  { %v4169_v19 = vpop.eup %4168  ;;  %v878_v13 = vmul.f32 %v4167_v57, %v4165_v43 }
 0x154   :  { %v4171_v21 = vpop.eup %4170 }
 0x155   :  { %v879_v4 = vmul.f32 %v4171_v21, %v4169_v19 }
 0x157   :  { %v880_v1 = vpack.c.bf16 %v879_v4, %v878_v13 }
 0x159   :  { %1131 = vmatmul.mubr.bf16.vlgmr.msra.gmra.mrb[28].mxu0 %v880_v1  ;;  %1174 = vmatmul.mubr.bf16.vlgmr.msra.gmra.mrb[44].mxu1 %v880_v1 }
 0x15a   :  { %1494 = vmatprep.mubr.bf16.mxu0 %v5635_v20  ;;  %1537 = vmatprep.mubr.bf16.mxu1 %v5635_v20 }
 0x15b   :  { %1463 = vmatpush1.bf16.msra.mxu0 %v4996_v61  ;;  %1506 = vmatpush1.bf16.msra.mxu1 %v5001_v5 }
 0x15c   :  { %1507 = vmatprep.subr.bf16.mxu1 %v4562_v30  ;;  %1464 = vmatprep.subr.bf16.mxu0 %v5010_v15  ;;  %v5030_v30 = vld [vmem:[%s5593_s2 + $0x40] ss:$16 sps:$4 sm:$0xff]  }
 0x15f   :  { %1465 = vmatpush1.bf16.msra.mxu0 %v5016_v12  ;;  %1508 = vmatpush1.bf16.msra.mxu1 %v4582_v33  ;;  %v5038_v33 = vld [vmem:[%s5593_s2 + $0x64] ss:$16 sps:$4 sm:$0xff]  }
 0x160   :  { %1509 = vmatprep.subr.bf16.mxu1 %v4594_v35  ;;  %1466 = vmatprep.subr.bf16.mxu0 %v5024_v46  ;;  %v5044_v35 = vld [vmem:[%s5593_s2 + $0x60] ss:$16 sps:$4 sm:$0xff]  }
 0x163   :  { %1467 = vmatpush1.bf16.msra.mxu0 %v5030_v30  ;;  %1510 = vmatpush1.bf16.msra.mxu1 %v4609_v38  ;;  %v5052_v38 = vld [vmem:[%s5593_s2 + $0x84] ss:$16 sps:$4 sm:$0xff]  }
 0x164   :  { %1511 = vmatprep.subr.bf16.mxu1 %v4621_v40  ;;  %1468 = vmatprep.subr.bf16.mxu0 %v5038_v33  ;;  %v5058_v40 = vld [vmem:[%s5593_s2 + $0x80] ss:$16 sps:$4 sm:$0xff]  }
 0x167   :  { %1469 = vmatpush1.bf16.msra.mxu0 %v5044_v35  ;;  %1512 = vmatpush1.bf16.msra.mxu1 %v4634_v42  ;;  %v5071_v42 = vld [vmem:[%s5593_s2 + $0xa0] ss:$16 sps:$4 sm:$0xff]  }
 0x168   :  { %1513 = vmatprep.subr.bf16.mxu1 %v4644_v44  ;;  %1470 = vmatprep.subr.bf16.mxu0 %v5052_v38  ;;  %v5078_v44 = vld [vmem:[%s5593_s2 + $0xc4] ss:$16 sps:$4 sm:$0xff]  }
 0x16b   :  { %1471 = vmatpush1.bf16.msra.mxu0 %v5058_v40  ;;  %1514 = vmatpush1.bf16.msra.mxu1 %v4659_v47  ;;  %v5085_v47 = vld [vmem:[%s5593_s2 + $0xc0] ss:$16 sps:$4 sm:$0xff]  }
 0x16c   :  { %1472 = vmatprep.subr.bf16.mxu0 %v5063_v6  ;;  %1515 = vmatprep.subr.bf16.mxu1 %v4667_v49  ;;  %v5092_v49 = vld [vmem:[%s5593_s2 + $0xe4] ss:$16 sps:$4 sm:$0xff]  }
 0x16f   :  { %1473 = vmatpush1.bf16.msra.mxu0 %v5071_v42  ;;  %1516 = vmatpush1.bf16.msra.mxu1 %v4680_v51  ;;  %v5099_v51 = vld [vmem:[%s5593_s2 + $0xe0] ss:$16 sps:$4 sm:$0xff]  }
 0x170   :  { %1474 = vmatprep.subr.bf16.mxu0 %v5078_v44  ;;  %1517 = vmatprep.subr.bf16.mxu1 %v4687_v52 }
 0x173   :  { %1475 = vmatpush1.bf16.msra.mxu0 %v5085_v47  ;;  %1518 = vmatpush1.bf16.msra.mxu1 %v4697_v54 }
 0x174   :  { %1476 = vmatprep.subr.bf16.mxu0 %v5092_v49  ;;  %1519 = vmatprep.subr.bf16.mxu1 %v4702_v55 }
 0x177   :  { %1477 = vmatpush1.bf16.msra.mxu0 %v5099_v51  ;;  %1520 = vmatpush1.bf16.msra.mxu1 %v4712_v56 }
 0x178   :  { %1826 = vmatprep.subr.bf16.mxu0 %v4986_v59  ;;  %1869 = vmatprep.subr.bf16.mxu1 %v4991_v8 }
 0x22c   :  { %v1132_v52 = vpop.f32.mrb[28].mxu0  ;;  %v1175_v58 = vpop.f32.mrb[44].mxu1 }
 0x22d   :  { %v1184_v54 = vadd.f32 %v1132_v52, %v4792_v50  ;;  %v1186_v62 = vadd.f32 %v1175_v58, %v4840_v24  ;;  %v1134_v10 = vpop.f32.mrb[29].mxu0  ;;  %v1177_v39 = vpop.f32.mrb[45].mxu1 }
 0x22e   :  { %v1185_v14 = vadd.f32 %v1134_v10, %v4804_v63  ;;  %v1187_v55 = vadd.f32 %v1177_v39, %v4852_v32  ;;  %v1136_v43 = vpop.f32.mrb[30].mxu0  ;;  %v1179_v57 = vpop.f32.mrb[46].mxu1 }
 0x22f   :  { %v3673_v19 = vmul.f32 -1.442695, %v1184_v54  ;;  %v1188_v56 = vadd.f32 %v1136_v43, %v4795_v53  ;;  %v1190_v21 = vadd.f32 %v1179_v57, %v4843_v25  ;;  %v1138_v13 = vpop.f32.mrb[31].mxu0  ;;  %v1181_v4 = vpop.f32.mrb[47].mxu1 }
 0x230   :  { %v3675_v1 = vmul.f32 -1.442695, %v1185_v14  ;;  %v1189_v50 = vadd.f32 %v1138_v13, %v4807_v0  ;;  %v1191_v24 = vadd.f32 %v1181_v4, %v4855_v37  ;;  %v3677_v32 = vmul.f32 -1.442695, %v1187_v55 }
 0x231   :  { %4172 = vpow2.f32 %v3673_v19  ;;  %v3674_v52 = vmul.f32 -1.442695, %v1188_v56 }
 0x232   :  { %4174 = vpow2.f32 %v3675_v1  ;;  %v3676_v63 = vmul.f32 -1.442695, %v1189_v50  ;;  %v3678_v25 = vmul.f32 -1.442695, %v1191_v24 }
 0x233   :  { %4176 = vpow2.f32 %v3674_v52 }
 0x234   :  { %4178 = vpow2.f32 %v3676_v63 }
 0x235   :  { %4180 = vtanh.f32 %v1186_v62 }
 0x236   :  { %4182 = vpow2.f32 %v3677_v32 }
 0x237   :  { %4184 = vtanh.f32 %v1190_v21 }
 0x23b   :  { %v4173_v58 = vpop.eup %4172 }
 0x23c   :  { %v4175_v54 = vpop.eup %4174  ;;  %v1198_v53 = vadd.f32 1.0, %v4173_v58 }
 0x23d   :  { %v1210_v10 = vadd.f32 1.0, %v4175_v54  ;;  %v4177_v39 = vpop.eup %4176 }
 0x23e   :  { %4186 = vrcp.f32 %v1198_v53  ;;  %v1199_v0 = vadd.f32 1.0, %v4177_v39  ;;  %v4179_v37 = vpop.eup %4178 }
 0x23f   :  { %4188 = vrcp.f32 %v1210_v10  ;;  %v1211_v14 = vadd.f32 1.0, %v4179_v37  ;;  %v4181_v43 = vpop.eup %4180  ;;  %v5150_v37 = vld [vmem:[%s5593_s2 + $0x28] ss:$16 sps:$4 sm:$0xff]  }
 0x240   :  { %4190 = vpow2.f32 %v3678_v25  ;;  %v4183_v57 = vpop.eup %4182 }
 0x241   :  { %4192 = vrcp.f32 %v1199_v0  ;;  %v4185_v55 = vpop.eup %4184  ;;  %v1224_v21 = vadd.f32 1.0, %v4183_v57  ;;  %v5169_v57 = vld [vmem:[%s5593_s2 + $0x6c] ss:$16 sps:$4 sm:$0xff]  }
 0x242   :  { %4194 = vrcp.f32 %v1211_v14  ;;  %v5157_v14 = vld [vmem:[%s5593_s2 + $0x4c] ss:$16 sps:$4 sm:$0xff]  }
 0x243   :  { %4196 = vrcp.f32 %v1224_v21  ;;  %v5216_v21 = vld [vmem:[%s5593_s2 + $0xec] ss:$16 sps:$4 sm:$0xff]  }
 0x248   :  { %v4187_v19 = vpop.eup %4186 }
 0x249   :  { %v4189_v62 = vpop.eup %4188  ;;  %v1234_v56 = vmul.f32 %v4187_v19, %v4181_v43  ;;  %v5162_v43 = vld [vmem:[%s5593_s2 + $0x48] ss:$16 sps:$4 sm:$0xff]   ;;  %v5181_v19 = vld [vmem:[%s5593_s2 + $0x8c] ss:$16 sps:$4 sm:$0xff]  }
 0x24a   :  { %v4191_v13 = vpop.eup %4190  ;;  %v1232_v4 = vmul.f32 %v4189_v62, %v4975_v31  ;;  %v5186_v62 = vld [vmem:[%s5593_s2 + $0x88] ss:$16 sps:$4 sm:$0xff]  }
 0x24b   :  { %v4193_v1 = vpop.eup %4192  ;;  %v1225_v63 = vadd.f32 1.0, %v4191_v13  ;;  %v5198_v13 = vld [vmem:[%s5593_s2 + $0xa8] ss:$16 sps:$4 sm:$0xff]  }
 0x24c   :  { %v5116_v50 = vadd.f32 %v1234_v56, %v1232_v4  ;;  %v1235_v24 = vmul.f32 %v4193_v1, %v4185_v55  ;;  %v4195_v52 = vpop.eup %4194  ;;  %v5174_v55 = vld [vmem:[%s5593_s2 + $0x68] ss:$16 sps:$4 sm:$0xff]   ;;  %v5191_v56 = vld [vmem:[%s5593_s2 + $0xac] ss:$16 sps:$4 sm:$0xff]  }
 0x24d   :  { %v1233_v32 = vmul.f32 %v4195_v52, %v4978_v7  ;;  %v4197_v54 = vpop.eup %4196  ;;  %v5145_v7 = vld [vmem:[%s5593_s2 + $0x2c] ss:$16 sps:$4 sm:$0xff]   ;;  %v5210_v1 = vld [vmem:[%s5593_s2 + $0xc8] ss:$16 sps:$4 sm:$0xff]  }
 0x24e   :  { %4198 = vtanh.f32 %v5116_v50  ;;  %v5204_v4 = vld [vmem:[%s5593_s2 + $0xcc] ss:$16 sps:$4 sm:$0xff]  }
 0x24f   :  { %v5120_v58 = vadd.f32 %v1235_v24, %v1233_v32  ;;  %4200 = vrcp.f32 %v1225_v63  ;;  %v5222_v24 = vld [vmem:[%s5593_s2 + $0xe8] ss:$16 sps:$4 sm:$0xff]  }
 0x251   :  { %4202 = vtanh.f32 %v5120_v58 }
 0x258   :  { %v4199_v53 = vpop.eup %4198 }
 0x259   :  { %v4201_v31 = vpop.eup %4200  ;;  %v1242_v10 = vmul.f32 %v4199_v53, %v4197_v54 }
 0x25b   :  { %v4203_v25 = vpop.eup %4202 }
 0x25c   :  { %v1243_v39 = vmul.f32 %v4203_v25, %v4201_v31 }
 0x25e   :  { %v1244_v0 = vpack.c.bf16 %v1243_v39, %v1242_v10 }
 0x260   :  { %1495 = vmatmul.mubr.bf16.vlgmr.msra.gmra.mrb[32].mxu0 %v1244_v0  ;;  %1538 = vmatmul.mubr.bf16.vlgmr.msra.gmra.mrb[48].mxu1 %v1244_v0 }
 0x261   :  { %1827 = vmatpush1.bf16.msra.mxu0 %v4996_v61  ;;  %1870 = vmatpush1.bf16.msra.mxu1 %v5001_v5 }
 0x262   :  { %1828 = vmatprep.subr.bf16.mxu0 %v5010_v15  ;;  %1858 = vmatprep.mubr.bf16.mxu0 %v5635_v20 }
 0x263   :  { %1901 = vmatprep.mubr.bf16.mxu1 %v5635_v20  ;;  %1871 = vmatprep.subr.bf16.mxu1 %v5145_v7 }
 0x265   :  { %1829 = vmatpush1.bf16.msra.mxu0 %v5016_v12  ;;  %1872 = vmatpush1.bf16.msra.mxu1 %v5150_v37 }
 0x266   :  { %1830 = vmatprep.subr.bf16.mxu0 %v5024_v46  ;;  %1873 = vmatprep.subr.bf16.mxu1 %v5157_v14 }
 0x269   :  { %1831 = vmatpush1.bf16.msra.mxu0 %v5030_v30  ;;  %1874 = vmatpush1.bf16.msra.mxu1 %v5162_v43 }
 0x26a   :  { %1832 = vmatprep.subr.bf16.mxu0 %v5038_v33  ;;  %1875 = vmatprep.subr.bf16.mxu1 %v5169_v57 }
 0x26d   :  { %1833 = vmatpush1.bf16.msra.mxu0 %v5044_v35  ;;  %1876 = vmatpush1.bf16.msra.mxu1 %v5174_v55 }
 0x26e   :  { %1834 = vmatprep.subr.bf16.mxu0 %v5052_v38  ;;  %1877 = vmatprep.subr.bf16.mxu1 %v5181_v19 }
 0x271   :  { %1835 = vmatpush1.bf16.msra.mxu0 %v5058_v40  ;;  %1878 = vmatpush1.bf16.msra.mxu1 %v5186_v62 }
 0x272   :  { %1836 = vmatprep.subr.bf16.mxu0 %v5063_v6  ;;  %1879 = vmatprep.subr.bf16.mxu1 %v5191_v56 }
 0x275   :  { %1837 = vmatpush1.bf16.msra.mxu0 %v5071_v42  ;;  %1880 = vmatpush1.bf16.msra.mxu1 %v5198_v13 }
 0x276   :  { %1838 = vmatprep.subr.bf16.mxu0 %v5078_v44  ;;  %1881 = vmatprep.subr.bf16.mxu1 %v5204_v4 }
 0x279   :  { %1839 = vmatpush1.bf16.msra.mxu0 %v5085_v47  ;;  %1882 = vmatpush1.bf16.msra.mxu1 %v5210_v1 }
 0x27a   :  { %1840 = vmatprep.subr.bf16.mxu0 %v5092_v49  ;;  %1883 = vmatprep.subr.bf16.mxu1 %v5216_v21 }
 0x27d   :  { %1841 = vmatpush1.bf16.msra.mxu0 %v5099_v51  ;;  %1884 = vmatpush1.bf16.msra.mxu1 %v5222_v24 }
 0x27e   :  { %2190 = vmatprep.subr.bf16.mxu0 %v4986_v59  ;;  %2233 = vmatprep.subr.bf16.mxu1 %v4991_v8 }
 0x333   :  { %v1496_v52 = vpop.f32.mrb[32].mxu0  ;;  %v1539_v63 = vpop.f32.mrb[48].mxu1 }
 0x334   :  { %v1548_v32 = vadd.f32 %v1496_v52, %v4820_v26  ;;  %v1550_v54 = vadd.f32 %v1539_v63, %v4866_v22  ;;  %v1498_v53 = vpop.f32.mrb[33].mxu0  ;;  %v1541_v31 = vpop.f32.mrb[49].mxu1 }
 0x335   :  { %v1549_v25 = vadd.f32 %v1498_v53, %v4828_v34  ;;  %v1551_v10 = vadd.f32 %v1541_v31, %v4878_v48  ;;  %v1500_v39 = vpop.f32.mrb[34].mxu0  ;;  %v1543_v0 = vpop.f32.mrb[50].mxu1 }
 0x336   :  { %v3711_v16 = vmul.f32 -1.442695, %v1548_v32  ;;  %v1552_v23 = vadd.f32 %v1500_v39, %v4823_v27  ;;  %v1554_v41 = vadd.f32 %v1543_v0, %v4869_v29  ;;  %v1502_v17 = vpop.f32.mrb[35].mxu0  ;;  %v1545_v9 = vpop.f32.mrb[51].mxu1 }
 0x337   :  { %v3713_v3 = vmul.f32 -1.442695, %v1549_v25  ;;  %v1553_v26 = vadd.f32 %v1502_v17, %v4831_v36  ;;  %v1555_v22 = vadd.f32 %v1545_v9, %v4881_v60  ;;  %v3715_v48 = vmul.f32 -1.442695, %v1551_v10 }
 0x338   :  { %4204 = vpow2.f32 %v3711_v16  ;;  %v3712_v52 = vmul.f32 -1.442695, %v1552_v23 }
 0x339   :  { %4206 = vpow2.f32 %v3713_v3  ;;  %v3714_v34 = vmul.f32 -1.442695, %v1553_v26  ;;  %v3716_v29 = vmul.f32 -1.442695, %v1555_v22 }
 0x33a   :  { %4208 = vpow2.f32 %v3712_v52 }
 0x33b   :  { %4210 = vpow2.f32 %v3714_v34 }
 0x33c   :  { %4212 = vtanh.f32 %v1550_v54 }
 0x33d   :  { %4214 = vpow2.f32 %v3715_v48 }
 0x33e   :  { %4216 = vtanh.f32 %v1554_v41 }
 0x342   :  { %v4205_v63 = vpop.eup %4204 }
 0x343   :  { %v4207_v32 = vpop.eup %4206  ;;  %v1562_v27 = vadd.f32 1.0, %v4205_v63 }
 0x344   :  { %v1574_v53 = vadd.f32 1.0, %v4207_v32  ;;  %v4209_v31 = vpop.eup %4208 }
 0x345   :  { %4218 = vrcp.f32 %v1562_v27  ;;  %v1563_v36 = vadd.f32 1.0, %v4209_v31  ;;  %v4211_v60 = vpop.eup %4210 }
 0x346   :  { %4220 = vrcp.f32 %v1574_v53  ;;  %v1575_v9 = vadd.f32 1.0, %v4211_v60  ;;  %v4213_v3 = vpop.eup %4212 }
 0x347   :  { %4222 = vpow2.f32 %v3716_v29  ;;  %v4215_v17 = vpop.eup %4214 }
 0x348   :  { %4224 = vrcp.f32 %v1563_v36  ;;  %v4217_v23 = vpop.eup %4216  ;;  %v1588_v41 = vadd.f32 1.0, %v4215_v17 }
 0x349   :  { %4226 = vrcp.f32 %v1575_v9 }
 0x34a   :  { %4228 = vrcp.f32 %v1588_v41  ;;  %v5637_v41 = vld [vmem:[#allocation14_spill] sm:$0xff] }
 0x34f   :  { %v4219_v16 = vpop.eup %4218 }
 0x350   :  { %v4221_v54 = vpop.eup %4220  ;;  %v1598_v25 = vmul.f32 %v4219_v16, %v4213_v3  ;;  %v5636_v16 = vld [vmem:[#allocation15_spill] sm:$0xff] }
 0x351   :  { %v4223_v10 = vpop.eup %4222  ;;  %v1596_v39 = vmul.f32 %v4221_v54, %v5116_v50 }
 0x352   :  { %v4225_v0 = vpop.eup %4224  ;;  %v1589_v34 = vadd.f32 1.0, %v4223_v10 }
 0x353   :  { %v5236_v26 = vadd.f32 %v1598_v25, %v1596_v39  ;;  %v1599_v22 = vmul.f32 %v4225_v0, %v4217_v23  ;;  %v4227_v52 = vpop.eup %4226 }
 0x354   :  { %v1597_v48 = vmul.f32 %v4227_v52, %v5120_v58  ;;  %v4229_v32 = vpop.eup %4228 }
 0x355   :  { %4230 = vtanh.f32 %v5236_v26 }
 0x356   :  { %v5240_v63 = vadd.f32 %v1599_v22, %v1597_v48  ;;  %4232 = vrcp.f32 %v1589_v34  ;;  %v5638_v48 = vld [vmem:[#allocation16_spill] sm:$0xff] }
 0x358   :  { %4234 = vtanh.f32 %v5240_v63 }
 0x35f   :  { %v4231_v27 = vpop.eup %4230 }
 0x360   :  { %v4233_v50 = vpop.eup %4232  ;;  %v1606_v53 = vmul.f32 %v4231_v27, %v4229_v32  ;;  %v5639_v32 = vld [vmem:[#allocation23_spill] sm:$0xff] }
 0x362   :  { %v4235_v29 = vpop.eup %4234 }
 0x363   :  { %v1607_v31 = vmul.f32 %v4235_v29, %v4233_v50 }
 0x365   :  { %v1608_v36 = vpack.c.bf16 %v1607_v31, %v1606_v53 }
 0x367   :  { %1859 = vmatmul.mubr.bf16.vlgmr.msra.gmra.mrb[36].mxu0 %v1608_v36  ;;  %1902 = vmatmul.mubr.bf16.vlgmr.msra.gmra.mrb[52].mxu1 %v1608_v36 }
 0x368   :  { %2191 = vmatpush1.bf16.msra.mxu0 %v4996_v61  ;;  %2234 = vmatpush1.bf16.msra.mxu1 %v5001_v5 }
 0x369   :  { %2192 = vmatprep.subr.bf16.mxu0 %v5010_v15  ;;  %2235 = vmatprep.subr.bf16.mxu1 %v5145_v7 }
 0x36a   :  { %2222 = vmatprep.mubr.bf16.mxu0 %v5635_v20  ;;  %2265 = vmatprep.mubr.bf16.mxu1 %v5635_v20 }
 0x36c   :  { %2193 = vmatpush1.bf16.msra.mxu0 %v5016_v12  ;;  %2236 = vmatpush1.bf16.msra.mxu1 %v5150_v37 }
 0x36d   :  { %2194 = vmatprep.subr.bf16.mxu0 %v5024_v46  ;;  %2237 = vmatprep.subr.bf16.mxu1 %v5157_v14 }
 0x370   :  { %2195 = vmatpush1.bf16.msra.mxu0 %v5030_v30  ;;  %2238 = vmatpush1.bf16.msra.mxu1 %v5162_v43 }
 0x371   :  { %2196 = vmatprep.subr.bf16.mxu0 %v5038_v33  ;;  %2239 = vmatprep.subr.bf16.mxu1 %v5169_v57 }
 0x374   :  { %2197 = vmatpush1.bf16.msra.mxu0 %v5044_v35  ;;  %2240 = vmatpush1.bf16.msra.mxu1 %v5174_v55 }
 0x375   :  { %2198 = vmatprep.subr.bf16.mxu0 %v5052_v38  ;;  %2241 = vmatprep.subr.bf16.mxu1 %v5181_v19 }
 0x378   :  { %2199 = vmatpush1.bf16.msra.mxu0 %v5058_v40  ;;  %2242 = vmatpush1.bf16.msra.mxu1 %v5186_v62 }
 0x379   :  { %2200 = vmatprep.subr.bf16.mxu0 %v5063_v6  ;;  %2243 = vmatprep.subr.bf16.mxu1 %v5191_v56 }
 0x37c   :  { %2201 = vmatpush1.bf16.msra.mxu0 %v5071_v42  ;;  %2244 = vmatpush1.bf16.msra.mxu1 %v5198_v13 }
 0x37d   :  { %2202 = vmatprep.subr.bf16.mxu0 %v5078_v44  ;;  %2245 = vmatprep.subr.bf16.mxu1 %v5204_v4 }
 0x380   :  { %2203 = vmatpush1.bf16.msra.mxu0 %v5085_v47  ;;  %2246 = vmatpush1.bf16.msra.mxu1 %v5210_v1 }
 0x381   :  { %2204 = vmatprep.subr.bf16.mxu0 %v5092_v49  ;;  %2247 = vmatprep.subr.bf16.mxu1 %v5216_v21 }
 0x384   :  { %2205 = vmatpush1.bf16.msra.mxu0 %v5099_v51  ;;  %2248 = vmatpush1.bf16.msra.mxu1 %v5222_v24 }
 0x385   :  { %2554 = vmatprep.subr.bf16.mxu0 %v4986_v59  ;;  %2597 = vmatprep.subr.bf16.mxu1 %v4991_v8 }
 0x43a   :  { %v1860_v58 = vpop.f32.mrb[36].mxu0  ;;  %v1903_v60 = vpop.f32.mrb[52].mxu1 }
 0x43b   :  { %v1912_v9 = vadd.f32 %v1860_v58, %v4846_v28  ;;  %v1914_v3 = vadd.f32 %v1903_v60, %v4894_v11  ;;  %v1862_v17 = vpop.f32.mrb[37].mxu0  ;;  %v1905_v23 = vpop.f32.mrb[53].mxu1 }
 0x43c   :  { %v1913_v54 = vadd.f32 %v1862_v17, %v5636_v16  ;;  %v1915_v25 = vadd.f32 %v1905_v23, %v4906_v18  ;;  %v1864_v10 = vpop.f32.mrb[38].mxu0  ;;  %v1907_v39 = vpop.f32.mrb[54].mxu1 }
 0x43d   :  { %v3749_v0 = vmul.f32 -1.442695, %v1912_v9  ;;  %v1916_v22 = vadd.f32 %v1864_v10, %v5637_v41  ;;  %v1918_v59 = vadd.f32 %v1907_v39, %v4897_v45  ;;  %v1866_v8 = vpop.f32.mrb[39].mxu0  ;;  %v1909_v52 = vpop.f32.mrb[55].mxu1 }
 0x43e   :  { %v3751_v34 = vmul.f32 -1.442695, %v1913_v54  ;;  %v1917_v28 = vadd.f32 %v1866_v8, %v5638_v48  ;;  %v1919_v11 = vadd.f32 %v1909_v52, %v5639_v32  ;;  %v3753_v18 = vmul.f32 -1.442695, %v1915_v25 }
 0x43f   :  { %4236 = vpow2.f32 %v3749_v0  ;;  %v3750_v27 = vmul.f32 -1.442695, %v1916_v22 }
 0x440   :  { %4238 = vpow2.f32 %v3751_v34  ;;  %v3752_v50 = vmul.f32 -1.442695, %v1917_v28  ;;  %v3754_v45 = vmul.f32 -1.442695, %v1919_v11 }
 0x441   :  { %4240 = vpow2.f32 %v3750_v27 }
 0x442   :  { %4242 = vpow2.f32 %v3752_v50 }
 0x443   :  { %4244 = vtanh.f32 %v1914_v3 }
 0x444   :  { %4246 = vpow2.f32 %v3753_v18 }
 0x445   :  { %4248 = vtanh.f32 %v1918_v59 }
 0x449   :  { %v4237_v29 = vpop.eup %4236 }
 0x44a   :  { %v4239_v53 = vpop.eup %4238  ;;  %v1926_v31 = vadd.f32 1.0, %v4237_v29 }
 0x44b   :  { %v1938_v36 = vadd.f32 1.0, %v4239_v53  ;;  %v4241_v58 = vpop.eup %4240 }
 0x44c   :  { %4250 = vrcp.f32 %v1926_v31  ;;  %v1927_v60 = vadd.f32 1.0, %v4241_v58  ;;  %v4243_v9 = vpop.eup %4242  ;;  %v5645_v58 = vld [vmem:[#allocation20_spill] sm:$0xff] }
 0x44d   :  { %4252 = vrcp.f32 %v1938_v36  ;;  %v1939_v17 = vadd.f32 1.0, %v4243_v9  ;;  %v4245_v23 = vpop.eup %4244  ;;  %v5646_v9 = vld [vmem:[#allocation28_spill] sm:$0xff] }
 0x44e   :  { %4254 = vpow2.f32 %v3754_v45  ;;  %v4247_v16 = vpop.eup %4246 }
 0x44f   :  { %4256 = vrcp.f32 %v1927_v60  ;;  %v4249_v54 = vpop.eup %4248  ;;  %v1952_v22 = vadd.f32 1.0, %v4247_v16 }
 0x450   :  { %4258 = vrcp.f32 %v1939_v17 }
 0x451   :  { %4260 = vrcp.f32 %v1952_v22 }
 0x456   :  { %v4251_v25 = vpop.eup %4250 }
 0x457   :  { %v4253_v3 = vpop.eup %4252  ;;  %v1962_v10 = vmul.f32 %v4251_v25, %v4245_v23 }
 0x458   :  { %v4255_v39 = vpop.eup %4254  ;;  %v1960_v0 = vmul.f32 %v4253_v3, %v5236_v26 }
 0x459   :  { %v4257_v41 = vpop.eup %4256  ;;  %v1953_v34 = vadd.f32 1.0, %v4255_v39 }
 0x45a   :  { %v5286_v59 = vadd.f32 %v1962_v10, %v1960_v0  ;;  %v1963_v8 = vmul.f32 %v4257_v41, %v4249_v54  ;;  %v4259_v52 = vpop.eup %4258 }
 0x45b   :  { %v1961_v48 = vmul.f32 %v4259_v52, %v5240_v63  ;;  %v4261_v32 = vpop.eup %4260 }
 0x45c   :  { %4262 = vtanh.f32 %v5286_v59 }
 0x45d   :  { %v5290_v28 = vadd.f32 %v1963_v8, %v1961_v48  ;;  %4264 = vrcp.f32 %v1953_v34 }
 0x45f   :  { %4266 = vtanh.f32 %v5290_v28 }
 0x466   :  { %v4263_v11 = vpop.eup %4262 }
 0x467   :  { %v4265_v26 = vpop.eup %4264  ;;  %v1970_v50 = vmul.f32 %v4263_v11, %v4261_v32 }
 0x469   :  { %v4267_v27 = vpop.eup %4266 }
 0x46a   :  { %v1971_v18 = vmul.f32 %v4267_v27, %v4265_v26 }
 0x46c   :  { %v1972_v29 = vpack.c.bf16 %v1971_v18, %v1970_v50 }
 0x46e   :  { %2223 = vmatmul.mubr.bf16.vlgmr.msra.gmra.mrb[40].mxu0 %v1972_v29  ;;  %2266 = vmatmul.mubr.bf16.vlgmr.msra.gmra.mrb[56].mxu1 %v1972_v29 }
 0x46f   :  { %2555 = vmatpush1.bf16.msra.mxu0 %v4996_v61  ;;  %2598 = vmatpush1.bf16.msra.mxu1 %v5001_v5 }
 0x470   :  { %2556 = vmatprep.subr.bf16.mxu0 %v5010_v15  ;;  %2599 = vmatprep.subr.bf16.mxu1 %v5145_v7  ;;  %v5640_v15 = vld [vmem:[#allocation17_spill] sm:$0xff] }
 0x471   :  { %2586 = vmatprep.mubr.bf16.mxu0 %v5635_v20  ;;  %2629 = vmatprep.mubr.bf16.mxu1 %v5635_v20 }
 0x473   :  { %2557 = vmatpush1.bf16.msra.mxu0 %v5016_v12  ;;  %2600 = vmatpush1.bf16.msra.mxu1 %v5150_v37 }
 0x474   :  { %2558 = vmatprep.subr.bf16.mxu0 %v5024_v46  ;;  %2601 = vmatprep.subr.bf16.mxu1 %v5157_v14 }
 0x477   :  { %2559 = vmatpush1.bf16.msra.mxu0 %v5030_v30  ;;  %2602 = vmatpush1.bf16.msra.mxu1 %v5162_v43 }
 0x478   :  { %2560 = vmatprep.subr.bf16.mxu0 %v5038_v33  ;;  %2603 = vmatprep.subr.bf16.mxu1 %v5169_v57 }
 0x47b   :  { %2561 = vmatpush1.bf16.msra.mxu0 %v5044_v35  ;;  %2604 = vmatpush1.bf16.msra.mxu1 %v5174_v55  ;;  %v5641_v35 = vld [vmem:[#allocation19_spill] sm:$0xff] }
 0x47c   :  { %2562 = vmatprep.subr.bf16.mxu0 %v5052_v38  ;;  %2605 = vmatprep.subr.bf16.mxu1 %v5181_v19 }
 0x47f   :  { %2563 = vmatpush1.bf16.msra.mxu0 %v5058_v40  ;;  %2606 = vmatpush1.bf16.msra.mxu1 %v5186_v62  ;;  %v5642_v40 = vld [vmem:[#allocation27_spill] sm:$0xff] }
 0x480   :  { %2564 = vmatprep.subr.bf16.mxu0 %v5063_v6  ;;  %2607 = vmatprep.subr.bf16.mxu1 %v5191_v56 }
 0x483   :  { %2565 = vmatpush1.bf16.msra.mxu0 %v5071_v42  ;;  %2608 = vmatpush1.bf16.msra.mxu1 %v5198_v13 }
 0x484   :  { %2566 = vmatprep.subr.bf16.mxu0 %v5078_v44  ;;  %2609 = vmatprep.subr.bf16.mxu1 %v5204_v4 }
 0x487   :  { %2567 = vmatpush1.bf16.msra.mxu0 %v5085_v47  ;;  %2610 = vmatpush1.bf16.msra.mxu1 %v5210_v1 }
 0x488   :  { %2568 = vmatprep.subr.bf16.mxu0 %v5092_v49  ;;  %2611 = vmatprep.subr.bf16.mxu1 %v5216_v21  ;;  %v5643_v49 = vld [vmem:[#allocation18_spill] sm:$0xff] }
 0x48b   :  { %2569 = vmatpush1.bf16.msra.mxu0 %v5099_v51  ;;  %2612 = vmatpush1.bf16.msra.mxu1 %v5222_v24  ;;  %v5644_v51 = vld [vmem:[#allocation26_spill] sm:$0xff] }
 0x541   :  { %v2224_v61 = vpop.f32.mrb[40].mxu0  ;;  %v2267_v5 = vpop.f32.mrb[56].mxu1 }
 0x542   :  { %v2276_v12 = vadd.f32 %v2224_v61, %v5640_v15  ;;  %v2278_v46 = vadd.f32 %v2267_v5, %v4920_v2  ;;  %v2226_v30 = vpop.f32.mrb[41].mxu0  ;;  %v2269_v33 = vpop.f32.mrb[57].mxu1 }
 0x543   :  { %v2277_v38 = vadd.f32 %v2226_v30, %v5641_v35  ;;  %v2279_v6 = vadd.f32 %v2269_v33, %v5642_v40  ;;  %v2228_v42 = vpop.f32.mrb[42].mxu0  ;;  %v2271_v44 = vpop.f32.mrb[58].mxu1 }
 0x544   :  { %v3787_v47 = vmul.f32 -1.442695, %v2276_v12  ;;  %v2280_v63 = vadd.f32 %v2228_v42, %v5643_v49  ;;  %v2282_v53 = vadd.f32 %v2271_v44, %v5644_v51  ;;  %v2230_v31 = vpop.f32.mrb[43].mxu0  ;;  %v2273_v45 = vpop.f32.mrb[59].mxu1  ;;  %v4089_v44 = vld [vmem:[%s5593_s2 + $0xc] ss:$16 sps:$4 sm:$0xff]  }
 0x545   :  { %v3789_v36 = vmul.f32 -1.442695, %v2277_v38  ;;  %v2281_v60 = vadd.f32 %v2230_v31, %v5645_v58  ;;  %v2283_v2 = vadd.f32 %v2273_v45, %v5646_v9  ;;  %v3791_v16 = vmul.f32 -1.442695, %v2279_v6  ;;  %v5357_v49 = vld [vmem:[%s5593_s2 + $0x8] ss:$16 sps:$4 sm:$0xff]   ;;  %2961 = vmatprep.subr.bf16.mxu1 %v4089_v44 }
 0x546   :  { %4268 = vpow2.f32 %v3787_v47  ;;  %v3788_v17 = vmul.f32 -1.442695, %v2280_v63  ;;  %v5352_v47 = vld [vmem:[%s5593_s2] ss:$16 sps:$4 sm:$0xff]   ;;  %v5364_v63 = vld [vmem:[%s5593_s2 + $0x24] ss:$16 sps:$4 sm:$0xff]  }
 0x547   :  { %4270 = vpow2.f32 %v3789_v36  ;;  %v3790_v23 = vmul.f32 -1.442695, %v2281_v60  ;;  %v3792_v10 = vmul.f32 -1.442695, %v2283_v2  ;;  %v5370_v51 = vld [vmem:[%s5593_s2 + $0x20] ss:$16 sps:$4 sm:$0xff]  }
 0x548   :  { %4272 = vpow2.f32 %v3788_v17  ;;  %v5417_v31 = vld [vmem:[%s5593_s2 + $0xa4] ss:$16 sps:$4 sm:$0xff]   ;;  %v5647_v36 = vld [vmem:[#allocation21_spill] sm:$0xff] }
 0x549   :  { %4274 = vpow2.f32 %v3790_v23  ;;  %v5649_v17 = vld [vmem:[#allocation24_spill] sm:$0xff] }
 0x54a   :  { %4276 = vtanh.f32 %v2278_v46 }
 0x54b   :  { %4278 = vpow2.f32 %v3791_v16  ;;  %v5650_v16 = vld [vmem:[#allocation31_spill] sm:$0xff] }
 0x54c   :  { %4280 = vtanh.f32 %v2282_v53  ;;  %v5378_v53 = vld [vmem:[%s5593_s2 + $0x44] ss:$16 sps:$4 sm:$0xff]  }
 0x550   :  { %v4269_v54 = vpop.eup %4268 }
 0x551   :  { %v4271_v25 = vpop.eup %4270  ;;  %v2290_v3 = vadd.f32 1.0, %v4269_v54 }
 0x552   :  { %v2302_v39 = vadd.f32 1.0, %v4271_v25  ;;  %v4273_v0 = vpop.eup %4272 }
 0x553   :  { %4282 = vrcp.f32 %v2290_v3  ;;  %v2291_v41 = vadd.f32 1.0, %v4273_v0  ;;  %v4275_v22 = vpop.eup %4274 }
 0x554   :  { %4284 = vrcp.f32 %v2302_v39  ;;  %v2303_v8 = vadd.f32 1.0, %v4275_v22  ;;  %v4277_v52 = vpop.eup %4276 }
 0x555   :  { %4286 = vpow2.f32 %v3792_v10  ;;  %v4279_v34 = vpop.eup %4278  ;;  %v5651_v10 = vld [vmem:[#allocation22_spill] sm:$0xff] }
 0x556   :  { %4288 = vrcp.f32 %v2291_v41  ;;  %v4281_v48 = vpop.eup %4280  ;;  %v2316_v29 = vadd.f32 1.0, %v4279_v34 }
 0x557   :  { %4290 = vrcp.f32 %v2303_v8 }
 0x558   :  { %4292 = vrcp.f32 %v2316_v29 }
 0x55d   :  { %v4283_v32 = vpop.eup %4282 }
 0x55e   :  { %v4285_v11 = vpop.eup %4284  ;;  %v2326_v26 = vmul.f32 %v4283_v32, %v4277_v52  ;;  %v5653_v52 = vld [vmem:[#allocation25_spill] sm:$0xff] }
 0x55f   :  { %v4287_v27 = vpop.eup %4286  ;;  %v2324_v50 = vmul.f32 %v4285_v11, %v5286_v59 }
 0x560   :  { %v4289_v18 = vpop.eup %4288  ;;  %v2317_v12 = vadd.f32 1.0, %v4287_v27 }
 0x561   :  { %v5334_v61 = vadd.f32 %v2326_v26, %v2324_v50  ;;  %v2327_v5 = vmul.f32 %v4289_v18, %v4281_v48  ;;  %v4291_v15 = vpop.eup %4290  ;;  %v5654_v48 = vld [vmem:[#allocation32_spill] sm:$0xff] }
 0x562   :  { %v2325_v46 = vmul.f32 %v4291_v15, %v5290_v28  ;;  %v4293_v33 = vpop.eup %4292  ;;  %v4086_v28 = vld [vmem:[%s5593_s2 + $0x4] ss:$16 sps:$4 sm:$0xff]  }
 0x563   :  { %4294 = vtanh.f32 %v5334_v61  ;;  %2918 = vmatprep.subr.bf16.mxu0 %v4086_v28 }
 0x564   :  { %v5338_v30 = vadd.f32 %v2327_v5, %v2325_v46  ;;  %4296 = vrcp.f32 %v2317_v12 }
 0x566   :  { %4298 = vtanh.f32 %v5338_v30 }
 0x56d   :  { %v4295_v35 = vpop.eup %4294 }
 0x56e   :  { %v4297_v59 = vpop.eup %4296  ;;  %v2334_v40 = vmul.f32 %v4295_v35, %v4293_v33 }
 0x570   :  { %v4299_v38 = vpop.eup %4298 }
 0x571   :  { %v2335_v6 = vmul.f32 %v4299_v38, %v4297_v59 }
 0x573   :  { %v2336_v42 = vpack.c.bf16 %v2335_v6, %v2334_v40 }
 0x575   :  { %2587 = vmatmul.mubr.bf16.vlgmr.msra.gmra.mrb[44].mxu0 %v2336_v42  ;;  %2630 = vmatmul.mubr.bf16.vlgmr.msra.gmra.mrb[60].mxu1 %v2336_v42 }
 0x576   :  { %2950 = vmatprep.mubr.bf16.mxu0 %v5635_v20  ;;  %2993 = vmatprep.mubr.bf16.mxu1 %v5635_v20 }
 0x577   :  { %2919 = vmatpush1.bf16.msra.mxu0 %v5352_v47  ;;  %2962 = vmatpush1.bf16.msra.mxu1 %v5357_v49 }
 0x578   :  { %2963 = vmatprep.subr.bf16.mxu1 %v5145_v7  ;;  %2920 = vmatprep.subr.bf16.mxu0 %v5364_v63  ;;  %v5384_v7 = vld [vmem:[%s5593_s2 + $0x40] ss:$16 sps:$4 sm:$0xff]  }
 0x57b   :  { %2921 = vmatpush1.bf16.msra.mxu0 %v5370_v51  ;;  %2964 = vmatpush1.bf16.msra.mxu1 %v5150_v37  ;;  %v5392_v37 = vld [vmem:[%s5593_s2 + $0x64] ss:$16 sps:$4 sm:$0xff]  }
 0x57c   :  { %2965 = vmatprep.subr.bf16.mxu1 %v5157_v14  ;;  %2922 = vmatprep.subr.bf16.mxu0 %v5378_v53  ;;  %v5398_v14 = vld [vmem:[%s5593_s2 + $0x60] ss:$16 sps:$4 sm:$0xff]  }
 0x57f   :  { %2923 = vmatpush1.bf16.msra.mxu0 %v5384_v7  ;;  %2966 = vmatpush1.bf16.msra.mxu1 %v5162_v43  ;;  %v5406_v43 = vld [vmem:[%s5593_s2 + $0x84] ss:$16 sps:$4 sm:$0xff]  }
 0x580   :  { %2967 = vmatprep.subr.bf16.mxu1 %v5169_v57  ;;  %2924 = vmatprep.subr.bf16.mxu0 %v5392_v37  ;;  %v5412_v57 = vld [vmem:[%s5593_s2 + $0x80] ss:$16 sps:$4 sm:$0xff]  }
 0x583   :  { %2925 = vmatpush1.bf16.msra.mxu0 %v5398_v14  ;;  %2968 = vmatpush1.bf16.msra.mxu1 %v5174_v55  ;;  %v5425_v55 = vld [vmem:[%s5593_s2 + $0xa0] ss:$16 sps:$4 sm:$0xff]  }
 0x584   :  { %2969 = vmatprep.subr.bf16.mxu1 %v5181_v19  ;;  %2926 = vmatprep.subr.bf16.mxu0 %v5406_v43  ;;  %v5432_v19 = vld [vmem:[%s5593_s2 + $0xc4] ss:$16 sps:$4 sm:$0xff]  }
 0x587   :  { %2927 = vmatpush1.bf16.msra.mxu0 %v5412_v57  ;;  %2970 = vmatpush1.bf16.msra.mxu1 %v5186_v62  ;;  %v5439_v62 = vld [vmem:[%s5593_s2 + $0xc0] ss:$16 sps:$4 sm:$0xff]  }
 0x588   :  { %2928 = vmatprep.subr.bf16.mxu0 %v5417_v31  ;;  %2971 = vmatprep.subr.bf16.mxu1 %v5191_v56  ;;  %v5446_v56 = vld [vmem:[%s5593_s2 + $0xe4] ss:$16 sps:$4 sm:$0xff]  }
 0x58b   :  { %2929 = vmatpush1.bf16.msra.mxu0 %v5425_v55  ;;  %2972 = vmatpush1.bf16.msra.mxu1 %v5198_v13  ;;  %v5453_v13 = vld [vmem:[%s5593_s2 + $0xe0] ss:$16 sps:$4 sm:$0xff]  }
 0x58c   :  { %2930 = vmatprep.subr.bf16.mxu0 %v5432_v19  ;;  %2973 = vmatprep.subr.bf16.mxu1 %v5204_v4 }
 0x58f   :  { %2931 = vmatpush1.bf16.msra.mxu0 %v5439_v62  ;;  %2974 = vmatpush1.bf16.msra.mxu1 %v5210_v1  ;;  %v5648_v1 = vld [vmem:[#allocation29_spill] sm:$0xff] }
 0x590   :  { %2932 = vmatprep.subr.bf16.mxu0 %v5446_v56  ;;  %2975 = vmatprep.subr.bf16.mxu1 %v5216_v21 }
 0x593   :  { %2933 = vmatpush1.bf16.msra.mxu0 %v5453_v13  ;;  %2976 = vmatpush1.bf16.msra.mxu1 %v5222_v24  ;;  %v5652_v24 = vld [vmem:[#allocation30_spill] sm:$0xff] }
 0x594   :  { %3282 = vmatprep.subr.bf16.mxu0 %v4086_v28  ;;  %3325 = vmatprep.subr.bf16.mxu1 %v4089_v44 }
 0x648   :  { %v2588_v4 = vpop.f32.mrb[44].mxu0  ;;  %v2631_v45 = vpop.f32.mrb[60].mxu1 }
 0x649   :  { %v2640_v58 = vadd.f32 %v2588_v4, %v5647_v36  ;;  %v2642_v60 = vadd.f32 %v2631_v45, %v5648_v1  ;;  %v2590_v9 = vpop.f32.mrb[45].mxu0  ;;  %v2633_v2 = vpop.f32.mrb[61].mxu1 }
 0x64a   :  { %v2641_v23 = vadd.f32 %v2590_v9, %v5649_v17  ;;  %v2643_v54 = vadd.f32 %v2633_v2, %v5650_v16  ;;  %v2592_v25 = vpop.f32.mrb[46].mxu0  ;;  %v2635_v21 = vpop.f32.mrb[62].mxu1 }
 0x64b   :  { %v3825_v3 = vmul.f32 -1.442695, %v2640_v58  ;;  %v2644_v39 = vadd.f32 %v2592_v25, %v5651_v10  ;;  %v2646_v0 = vadd.f32 %v2635_v21, %v5652_v24  ;;  %v2594_v41 = vpop.f32.mrb[47].mxu0  ;;  %v2637_v22 = vpop.f32.mrb[63].mxu1  ;;  %v5656_v10 = vld [vmem:[#allocation33_spill] sm:$0xff] }
 0x64c   :  { %v3827_v8 = vmul.f32 -1.442695, %v2641_v23  ;;  %v2645_v34 = vadd.f32 %v2594_v41, %v5653_v52  ;;  %v2647_v32 = vadd.f32 %v2637_v22, %v5654_v48  ;;  %v3829_v27 = vmul.f32 -1.442695, %v2643_v54  ;;  %v5657_v41 = vld [vmem:[#allocation8_spill] sm:$0xff] }
 0x64d   :  { %4300 = vpow2.f32 %v3825_v3  ;;  %v3826_v11 = vmul.f32 -1.442695, %v2644_v39 }
 0x64e   :  { %4302 = vpow2.f32 %v3827_v8  ;;  %v3828_v26 = vmul.f32 -1.442695, %v2645_v34  ;;  %v3830_v5 = vmul.f32 -1.442695, %v2647_v32  ;;  %v5658_v8 = vld [vmem:[#allocation35_spill] sm:$0xff] }
 0x64f   :  { %4304 = vpow2.f32 %v3826_v11  ;;  %v5659_v11 = vld [vmem:[#allocation7_spill] sm:$0xff] }
 0x650   :  { %4306 = vpow2.f32 %v3828_v26 }
 0x651   :  { %4308 = vtanh.f32 %v2642_v60 }
 0x652   :  { %4310 = vpow2.f32 %v3829_v27  ;;  %v5660_v27 = vld [vmem:[#allocation34_spill] sm:$0xff] }
 0x653   :  { %4312 = vtanh.f32 %v2646_v0 }
 0x657   :  { %v4301_v50 = vpop.eup %4300 }
 0x658   :  { %v4303_v18 = vpop.eup %4302  ;;  %v2654_v29 = vadd.f32 1.0, %v4301_v50 }
 0x659   :  { %v2666_v15 = vadd.f32 1.0, %v4303_v18  ;;  %v4305_v12 = vpop.eup %4304 }
 0x65a   :  { %4314 = vrcp.f32 %v2654_v29  ;;  %v2655_v46 = vadd.f32 1.0, %v4305_v12  ;;  %v4307_v33 = vpop.eup %4306 }
 0x65b   :  { %4316 = vrcp.f32 %v2666_v15  ;;  %v2667_v35 = vadd.f32 1.0, %v4307_v33  ;;  %v4309_v59 = vpop.eup %4308  ;;  %v5661_v15 = vld [vmem:[#allocation9_spill] sm:$0xff] }
 0x65c   :  { %4318 = vpow2.f32 %v3830_v5  ;;  %v4311_v38 = vpop.eup %4310 }
 0x65d   :  { %4320 = vrcp.f32 %v2655_v46  ;;  %v4313_v40 = vpop.eup %4312  ;;  %v2680_v36 = vadd.f32 1.0, %v4311_v38  ;;  %v5662_v46 = vld [vmem:[#allocation36_spill] sm:$0xff] }
 0x65e   :  { %4322 = vrcp.f32 %v2667_v35 }
 0x65f   :  { %4324 = vrcp.f32 %v2680_v36 }
 0x664   :  { %v4315_v6 = vpop.eup %4314 }
 0x665   :  { %v4317_v42 = vpop.eup %4316  ;;  %v2690_v28 = vmul.f32 %v4315_v6, %v4309_v59 }
 0x666   :  { %v4319_v44 = vpop.eup %4318  ;;  %v2688_v4 = vmul.f32 %v4317_v42, %v5334_v61 }
 0x667   :  { %v4321_v45 = vpop.eup %4320  ;;  %v2681_v9 = vadd.f32 1.0, %v4319_v44 }
 0x668   :  { %v5468_v58 = vadd.f32 %v2690_v28, %v2688_v4  ;;  %v2691_v1 = vmul.f32 %v4321_v45, %v4313_v40  ;;  %v4323_v60 = vpop.eup %4322 }
 0x669   :  { %v2689_v2 = vmul.f32 %v4323_v60, %v5338_v30  ;;  %v4325_v23 = vpop.eup %4324  ;;  %v4111_v30 = vld [vmem:[%s5593_s2 + $0x28] ss:$16 sps:$4 sm:$0xff]  }
 0x66a   :  { %4326 = vtanh.f32 %v5468_v58 }
 0x66b   :  { %v5472_v17 = vadd.f32 %v2691_v1, %v2689_v2  ;;  %4328 = vrcp.f32 %v2681_v9 }
 0x66d   :  { %4330 = vtanh.f32 %v5472_v17 }
 0x674   :  { %v4327_v16 = vpop.eup %4326 }
 0x675   :  { %v4329_v61 = vpop.eup %4328  ;;  %v2698_v25 = vmul.f32 %v4327_v16, %v4325_v23 }
 0x677   :  { %v4331_v54 = vpop.eup %4330 }
 0x678   :  { %v2699_v21 = vmul.f32 %v4331_v54, %v4329_v61 }
 0x67a   :  { %v2700_v3 = vpack.c.bf16 %v2699_v21, %v2698_v25 }
 0x67c   :  { %2951 = vmatmul.mubr.bf16.vlgmr.msra.gmra.mrb[48].mxu0 %v2700_v3  ;;  %2994 = vmatmul.mubr.bf16.vlgmr.msra.gmra.mrb[64].mxu1 %v2700_v3 }
 0x67d   :  { %3283 = vmatpush1.bf16.msra.mxu0 %v5352_v47  ;;  %3326 = vmatpush1.bf16.msra.mxu1 %v5357_v49  ;;  %v4116_v47 = vld [vmem:[%s5593_s2 + $0x4c] ss:$16 sps:$4 sm:$0xff]   ;;  %v4114_v49 = vld [vmem:[%s5593_s2 + $0x48] ss:$16 sps:$4 sm:$0xff]  }
 0x67e   :  { %3284 = vmatprep.subr.bf16.mxu0 %v5364_v63  ;;  %3314 = vmatprep.mubr.bf16.mxu0 %v5635_v20  ;;  %v4119_v63 = vld [vmem:[%s5593_s2 + $0x6c] ss:$16 sps:$4 sm:$0xff]  }
 0x67f   :  { %3357 = vmatprep.mubr.bf16.mxu1 %v5635_v20  ;;  %v4113_v20 = vld [vmem:[%s5593_s2 + $0x2c] ss:$16 sps:$4 sm:$0xff]  }
 0x680   :  { %3327 = vmatprep.subr.bf16.mxu1 %v4113_v20 }
 0x681   :  { %3285 = vmatpush1.bf16.msra.mxu0 %v5370_v51  ;;  %3328 = vmatpush1.bf16.msra.mxu1 %v4111_v30  ;;  %v4117_v51 = vld [vmem:[%s5593_s2 + $0x68] ss:$16 sps:$4 sm:$0xff]  }
 0x682   :  { %3286 = vmatprep.subr.bf16.mxu0 %v5378_v53  ;;  %3329 = vmatprep.subr.bf16.mxu1 %v4116_v47  ;;  %v4122_v53 = vld [vmem:[%s5593_s2 + $0x8c] ss:$16 sps:$4 sm:$0xff]  }
 0x685   :  { %3287 = vmatpush1.bf16.msra.mxu0 %v5384_v7  ;;  %3330 = vmatpush1.bf16.msra.mxu1 %v4114_v49  ;;  %v4120_v7 = vld [vmem:[%s5593_s2 + $0x88] ss:$16 sps:$4 sm:$0xff]  }
 0x686   :  { %3288 = vmatprep.subr.bf16.mxu0 %v5392_v37  ;;  %3331 = vmatprep.subr.bf16.mxu1 %v4119_v63  ;;  %v4125_v37 = vld [vmem:[%s5593_s2 + $0xac] ss:$16 sps:$4 sm:$0xff]  }
 0x689   :  { %3289 = vmatpush1.bf16.msra.mxu0 %v5398_v14  ;;  %3332 = vmatpush1.bf16.msra.mxu1 %v4117_v51  ;;  %v4123_v14 = vld [vmem:[%s5593_s2 + $0xa8] ss:$16 sps:$4 sm:$0xff]  }
 0x68a   :  { %3290 = vmatprep.subr.bf16.mxu0 %v5406_v43  ;;  %3333 = vmatprep.subr.bf16.mxu1 %v4122_v53  ;;  %v4128_v43 = vld [vmem:[%s5593_s2 + $0xcc] ss:$16 sps:$4 sm:$0xff]  }
 0x68d   :  { %3291 = vmatpush1.bf16.msra.mxu0 %v5412_v57  ;;  %3334 = vmatpush1.bf16.msra.mxu1 %v4120_v7  ;;  %v4126_v57 = vld [vmem:[%s5593_s2 + $0xc8] ss:$16 sps:$4 sm:$0xff]  }
 0x68e   :  { %3292 = vmatprep.subr.bf16.mxu0 %v5417_v31  ;;  %3335 = vmatprep.subr.bf16.mxu1 %v4125_v37  ;;  %v4131_v31 = vld [vmem:[%s5593_s2 + $0xec] ss:$16 sps:$4 sm:$0xff]  }
 0x691   :  { %3293 = vmatpush1.bf16.msra.mxu0 %v5425_v55  ;;  %3336 = vmatpush1.bf16.msra.mxu1 %v4123_v14  ;;  %v4129_v55 = vld [vmem:[%s5593_s2 + $0xe8] ss:$16 sps:$4 sm:$0xff]  }
 0x692   :  { %3294 = vmatprep.subr.bf16.mxu0 %v5432_v19  ;;  %3337 = vmatprep.subr.bf16.mxu1 %v4128_v43 }
 0x695   :  { %3295 = vmatpush1.bf16.msra.mxu0 %v5439_v62  ;;  %3338 = vmatpush1.bf16.msra.mxu1 %v4126_v57 }
 0x696   :  { %3296 = vmatprep.subr.bf16.mxu0 %v5446_v56  ;;  %3339 = vmatprep.subr.bf16.mxu1 %v4131_v31  ;;  %v5655_v56 = vld [vmem:[#allocation6_spill] sm:$0xff]  ;;  %v4397_v31 = vmov 0.0  }
 0x699   :  { %3297 = vmatpush1.bf16.msra.mxu0 %v5453_v13  ;;  %3340 = vmatpush1.bf16.msra.mxu1 %v4129_v55  ;;  %v4133_v55 = vld [vmem:[%s5595_s4 + $0x8] sm:$0xff]  }
 0x69a   :  { %3925 = vmatprep.subr.bf16.mxu0 %v4397_v31 }
 0x74f   :  { %v2952_v19 = vpop.f32.mrb[48].mxu0  ;;  %v2995_v62 = vpop.f32.mrb[64].mxu1 }
 0x750   :  { %v3004_v13 = vadd.f32 %v2952_v19, %v5655_v56  ;;  %v3006_v39 = vadd.f32 %v2995_v62, %v5656_v10  ;;  %v2954_v24 = vpop.f32.mrb[49].mxu0  ;;  %v2997_v0 = vpop.f32.mrb[65].mxu1  ;;  %v4134_v19 = vld [vmem:[%s5595_s4 + $0x10] sm:$0xff]   ;;  %v4135_v62 = vld [vmem:[%s5595_s4 + $0x18] sm:$0xff]   ;;  %v4136_v56 = vld [vmem:[%s5595_s4 + $0x20] sm:$0xff]  }
 0x751   :  { %v3005_v22 = vadd.f32 %v2954_v24, %v5657_v41  ;;  %v3007_v52 = vadd.f32 %v2997_v0, %v5658_v8  ;;  %v2956_v34 = vpop.f32.mrb[50].mxu0  ;;  %v2999_v48 = vpop.f32.mrb[66].mxu1  ;;  %v4138_v10 = vld [vmem:[%s5595_s4 + $0x30] sm:$0xff]   ;;  %v5663_v41 = vld [vmem:[#allocation10_spill] sm:$0xff]  ;;  %v5664_v8 = vld [vmem:[#allocation37_spill] sm:$0xff] }
 0x752   :  { %v3863_v32 = vmul.f32 -1.442695, %v3004_v13  ;;  %v3008_v26 = vadd.f32 %v2956_v34, %v5659_v11  ;;  %v3010_v50 = vadd.f32 %v2999_v48, %v5660_v27  ;;  %v2958_v18 = vpop.f32.mrb[51].mxu0  ;;  %v3001_v29 = vpop.f32.mrb[67].mxu1  ;;  %v4137_v13 = vld [vmem:[%s5595_s4 + $0x28] sm:$0xff]  }
 0x753   :  { %v3865_v5 = vmul.f32 -1.442695, %v3005_v22  ;;  %v3009_v12 = vadd.f32 %v2958_v18, %v5661_v15  ;;  %v3011_v33 = vadd.f32 %v3001_v29, %v5662_v46  ;;  %v3867_v38 = vmul.f32 -1.442695, %v3007_v52 }
 0x754   :  { %4332 = vpow2.f32 %v3863_v32  ;;  %v3864_v35 = vmul.f32 -1.442695, %v3008_v26  ;;  %v5665_v32 = vld [vmem:[#allocation12_spill] sm:$0xff]  ;;  %v5666_v26 = vld [vmem:[#allocation39_spill] sm:$0xff] }
 0x755   :  { %4334 = vpow2.f32 %v3865_v5  ;;  %v3866_v59 = vmul.f32 -1.442695, %v3009_v12  ;;  %v3868_v28 = vmul.f32 -1.442695, %v3011_v33  ;;  %v5667_v5 = vld [vmem:[#allocation11_spill] sm:$0xff]  ;;  %v5668_v12 = vld [vmem:[#allocation38_spill] sm:$0xff] }
 0x756   :  { %4336 = vpow2.f32 %v3864_v35 }
 0x757   :  { %4338 = vpow2.f32 %v3866_v59 }
 0x758   :  { %4340 = vtanh.f32 %v3006_v39  ;;  %v4139_v39 = vld [vmem:[%s5595_s4 + $0x38] sm:$0xff]  }
 0x759   :  { %4342 = vpow2.f32 %v3867_v38  ;;  %v5669_v38 = vld [vmem:[#allocation13_spill] sm:$0xff] }
 0x75a   :  { %4344 = vtanh.f32 %v3010_v50 }
 0x75e   :  { %v4333_v40 = vpop.eup %4332 }
 0x75f   :  { %v4335_v6 = vpop.eup %4334  ;;  %v3018_v42 = vadd.f32 1.0, %v4333_v40 }
 0x760   :  { %v3030_v44 = vadd.f32 1.0, %v4335_v6  ;;  %v4337_v4 = vpop.eup %4336  ;;  %v5670_v6 = vld [vmem:[#allocation40_spill] sm:$0xff] }
 0x761   :  { %4346 = vrcp.f32 %v3018_v42  ;;  %v3019_v45 = vadd.f32 1.0, %v4337_v4  ;;  %v4339_v36 = vpop.eup %4338 }
 0x762   :  { %4348 = vrcp.f32 %v3030_v44  ;;  %v3031_v1 = vadd.f32 1.0, %v4339_v36  ;;  %v4341_v60 = vpop.eup %4340 }
 0x763   :  { %4350 = vpow2.f32 %v3868_v28  ;;  %v4343_v9 = vpop.eup %4342 }
 0x764   :  { %4352 = vrcp.f32 %v3019_v45  ;;  %v4345_v2 = vpop.eup %4344  ;;  %v3044_v3 = vadd.f32 1.0, %v4343_v9 }
 0x765   :  { %4354 = vrcp.f32 %v3031_v1 }
 0x766   :  { %4356 = vrcp.f32 %v3044_v3 }
 0x76b   :  { %v4347_v23 = vpop.eup %4346 }
 0x76c   :  { %v4349_v16 = vpop.eup %4348  ;;  %v3054_v61 = vmul.f32 %v4347_v23, %v4341_v60 }
 0x76d   :  { %v4351_v54 = vpop.eup %4350  ;;  %v3052_v25 = vmul.f32 %v4349_v16, %v5468_v58 }
 0x76e   :  { %v4353_v21 = vpop.eup %4352  ;;  %v3045_v49 = vadd.f32 1.0, %v4351_v54 }
 0x76f   :  { %v5544_v20 = vadd.f32 %v3054_v61, %v3052_v25  ;;  %v3055_v30 = vmul.f32 %v4353_v21, %v4345_v2  ;;  %v4355_v47 = vpop.eup %4354 }
 0x770   :  { %v3053_v63 = vmul.f32 %v4355_v47, %v5472_v17  ;;  %v4357_v53 = vpop.eup %4356  ;;  %v4132_v17 = vld [vmem:[%s5595_s4] sm:$0xff]  }
 0x771   :  { %4358 = vtanh.f32 %v5544_v20 }
 0x772   :  { %v5548_v51 = vadd.f32 %v3055_v30, %v3053_v63  ;;  %4360 = vrcp.f32 %v3045_v49 }
 0x774   :  { %4362 = vtanh.f32 %v5548_v51 }
 0x77b   :  { %v4359_v7 = vpop.eup %4358 }
 0x77c   :  { %v4361_v58 = vpop.eup %4360  ;;  %v3062_v14 = vmul.f32 %v4359_v7, %v4357_v53 }
 0x77e   :  { %v4363_v37 = vpop.eup %4362 }
 0x77f   :  { %v3063_v43 = vmul.f32 %v4363_v37, %v4361_v58 }
 0x781   :  { %v3064_v57 = vpack.c.bf16 %v3063_v43, %v3062_v14 }
 0x783   :  { %3315 = vmatmul.mubr.bf16.vlgmr.msra.gmra.mrb[52].mxu0 %v3064_v57  ;;  %3358 = vmatmul.mubr.bf16.vlgmr.msra.gmra.mrb[68].mxu1 %v3064_v57 }
 0x784   :  { %3926 = vmatpush3.bf16.msra.mxu0 %v4132_v17  ;;  %3941 = vmatprep.mubr.msk.bf16.mxu0 %vm4398_vm1, %v4397_v31 }
 0x785   :  { %3927 = vmatprep.subr.bf16.mxu0 %v4397_v31 }
 0x788   :  { %3928 = vmatpush3.bf16.msra.mxu0 %v4133_v55 }
 0x789   :  { %3929 = vmatprep.subr.bf16.mxu0 %v4397_v31 }
 0x78c   :  { %3930 = vmatpush3.bf16.msra.mxu0 %v4134_v19 }
 0x78d   :  { %3931 = vmatprep.subr.bf16.mxu0 %v4397_v31 }
 0x790   :  { %3932 = vmatpush3.bf16.msra.mxu0 %v4135_v62 }
 0x791   :  { %3933 = vmatprep.subr.bf16.mxu0 %v4397_v31 }
 0x794   :  { %3934 = vmatpush3.bf16.msra.mxu0 %v4136_v56 }
 0x795   :  { %3935 = vmatprep.subr.bf16.mxu0 %v4397_v31 }
 0x798   :  { %3936 = vmatpush3.bf16.msra.mxu0 %v4137_v13 }
 0x799   :  { %3937 = vmatprep.subr.bf16.mxu0 %v4397_v31 }
 0x79c   :  { %3938 = vmatpush3.bf16.msra.mxu0 %v4138_v10 }
 0x79d   :  { %3939 = vmatprep.subr.bf16.mxu0 %v4397_v31 }
 0x7a0   :  { %3940 = vmatpush3.bf16.msra.mxu0 %v4139_v39 }
 0x856   :  { %v3316_v24 = vpop.f32.mrb[52].mxu0  ;;  %v3359_v0 = vpop.f32.mrb[68].mxu1 }
 0x857   :  { %v3368_v22 = vadd.f32 %v3316_v24, %v5663_v41  ;;  %v3370_v52 = vadd.f32 %v3359_v0, %v5664_v8  ;;  %v3318_v34 = vpop.f32.mrb[53].mxu0  ;;  %v3361_v48 = vpop.f32.mrb[69].mxu1 }
 0x858   :  { %v3369_v11 = vadd.f32 %v3318_v34, %v5665_v32  ;;  %v3371_v27 = vadd.f32 %v3361_v48, %v5666_v26  ;;  %v3320_v50 = vpop.f32.mrb[54].mxu0  ;;  %v3363_v18 = vpop.f32.mrb[70].mxu1 }
 0x859   :  { %v3901_v29 = vmul.f32 -1.442695, %v3368_v22  ;;  %v3372_v15 = vadd.f32 %v3320_v50, %v5667_v5  ;;  %v3374_v46 = vadd.f32 %v3363_v18, %v5668_v12  ;;  %v3322_v33 = vpop.f32.mrb[55].mxu0  ;;  %v3365_v35 = vpop.f32.mrb[71].mxu1 }
 0x85a   :  { %v3903_v59 = vmul.f32 -1.442695, %v3369_v11  ;;  %v3373_v40 = vadd.f32 %v3322_v33, %v5669_v38  ;;  %v3375_v42 = vadd.f32 %v3365_v35, %v5670_v6  ;;  %v3905_v4 = vmul.f32 -1.442695, %v3371_v27 }
 0x85b   :  { %4364 = vpow2.f32 %v3901_v29  ;;  %v3902_v28 = vmul.f32 -1.442695, %v3372_v15 }
 0x85c   :  { %4366 = vpow2.f32 %v3903_v59  ;;  %v3904_v44 = vmul.f32 -1.442695, %v3373_v40  ;;  %v3906_v60 = vmul.f32 -1.442695, %v3375_v42 }
 0x85d   :  { %4368 = vpow2.f32 %v3902_v28 }
 0x85e   :  { %4370 = vpow2.f32 %v3904_v44 }
 0x85f   :  { %4372 = vtanh.f32 %v3370_v52 }
 0x860   :  { %4374 = vpow2.f32 %v3905_v4 }
 0x861   :  { %4376 = vtanh.f32 %v3374_v46 }
 0x865   :  { %v4365_v45 = vpop.eup %4364 }
 0x866   :  { %v4367_v36 = vpop.eup %4366  ;;  %v3382_v1 = vadd.f32 1.0, %v4365_v45 }
 0x867   :  { %v3394_v9 = vadd.f32 1.0, %v4367_v36  ;;  %v4369_v2 = vpop.eup %4368 }
 0x868   :  { %4378 = vrcp.f32 %v3382_v1  ;;  %v3383_v23 = vadd.f32 1.0, %v4369_v2  ;;  %v4371_v16 = vpop.eup %4370 }
 0x869   :  { %4380 = vrcp.f32 %v3394_v9  ;;  %v3395_v61 = vadd.f32 1.0, %v4371_v16  ;;  %v4373_v54 = vpop.eup %4372 }
 0x86a   :  { %4382 = vpow2.f32 %v3906_v60  ;;  %v4375_v25 = vpop.eup %4374 }
 0x86b   :  { %4384 = vrcp.f32 %v3383_v23  ;;  %v4377_v21 = vpop.eup %4376  ;;  %v3408_v49 = vadd.f32 1.0, %v4375_v25 }
 0x86c   :  { %4386 = vrcp.f32 %v3395_v61 }
 0x86d   :  { %4388 = vrcp.f32 %v3408_v49 }
 0x872   :  { %v4379_v3 = vpop.eup %4378 }
 0x873   :  { %v4381_v30 = vpop.eup %4380  ;;  %v3418_v47 = vmul.f32 %v4379_v3, %v4373_v54 }
 0x874   :  { %v4383_v63 = vpop.eup %4382  ;;  %v3416_v53 = vmul.f32 %v4381_v30, %v5544_v20  ;;  %v11_v20 = vstv %s5596_s5 }
 0x875   :  { %v4385_v7 = vpop.eup %4384  ;;  %v3409_v43 = vadd.f32 1.0, %v4383_v63  ;;  %12 = vst [vmem:[#allocation5] sm:$0x1] %v11_v20 }
 0x876   :  { %v3420_v58 = vadd.f32 %v3418_v47, %v3416_v53  ;;  %v3419_v37 = vmul.f32 %v4385_v7, %v4377_v21  ;;  %v4387_v14 = vpop.eup %4386 }
 0x877   :  { %v3417_v57 = vmul.f32 %v4387_v14, %v5548_v51  ;;  %v4389_v31 = vpop.eup %4388 }
 0x878   :  { %4390 = vtanh.f32 %v3420_v58 }
 0x879   :  { %v3421_v17 = vadd.f32 %v3419_v37, %v3417_v57  ;;  %4392 = vrcp.f32 %v3409_v43 }
 0x87b   :  { %4394 = vtanh.f32 %v3421_v17 }
 0x87c   :  { %v3915_v52 = vld [vmem:[#allocation5] ss:$0 sm:$0xff] }
 0x882   :  { %v4391_v55 = vpop.eup %4390 }
 0x883   :  { %v3426_v19 = vmul.f32 %v4391_v55, %v4389_v31  ;;  %v4393_v62 = vpop.eup %4392 }
 0x885   :  { %v4395_v56 = vpop.eup %4394 }
 0x886   :  { %v3427_v13 = vmul.f32 %v4395_v56, %v4393_v62 }
 0x888   :  { %v3428_v10 = vpack.c.bf16 %v3427_v13, %v3426_v19 }
 0x88a   :  { %3942 = vmatmul.mubr.bf16.vlgmr.msra.gmra.mrb[56].mxu0 %v3428_v10  ;;  %v3432_v39 = vrot.slane %v3428_v10, 4 }
 0x88c   :  { %v3434_v24 = vunpack.c.l.bf16 %v3432_v39 }
 0x95d   :  { %v3533_v0 = vpop.f32.mrb[56].mxu0 }
 0x95e   :  { %v3943_v51 = vpop.f32.mrb[57].mxu0  ;;  %v3539_v41 = vmul.f32 %v3533_v0, %v3434_v24 }
 0x95f   :  { %v3536_v22 = vpop.f32.mrb[58].mxu0 }
 0x960   :  { %v3944_v8 = vpop.f32.mrb[59].mxu0  ;;  %3540 = vadd.xlane.f32.xlu0 %v3539_v41 }
 0x9ed   :  { %v3541_v34 = vpop.xlane.xlu0 %3540 }
 0x9ee   :  { %v3549_v48 = vadd.f32 %v3915_v52, %v3541_v34 }
 0x9f0   :  { %3551 = vst.msk [vmem:[%s5597_s6] sm:$0xff] %vm3550_vm2, %v3549_v48 }

</bundles_post_ra>
